<compile_context>
chip_gen: v7x
topology: tpu7x:2x2x1
jax: 0.10.0
libtpu: 0.0.40
codegen_flags: <defaults>
</compile_context>

<pallas_src>
import functools

import jax
import jax.numpy as jnp
import numpy as np
from jax.experimental import pallas as pl
from jax.experimental.pallas import tpu as pltpu

MIN_DISTANCE = 0.02212141876755244
MAX_DISTANCE = 5043.998712454391
R_EARTH = 6371.0


def _round_up(x, m):
    return (x + m - 1) // m * m


def _loss_kernel(zr_ref, zc_ref, e_ref, out_ref,
                 m_scr, l_scr, sw_scr, swsim_scr, *, inv_t, m_true):
    tm = zr_ref.shape[0]
    tn = zc_ref.shape[0]
    i = pl.program_id(0)
    j = pl.program_id(1)
    nj = pl.num_programs(1)

    @pl.when(j == 0)
    def _init():
        m_scr[...] = jnp.full_like(m_scr, -jnp.inf)
        l_scr[...] = jnp.zeros_like(l_scr)
        sw_scr[...] = jnp.zeros_like(sw_scr)
        swsim_scr[...] = jnp.zeros_like(swsim_scr)

    # F.normalize(dim=1): x * rsqrt(max(||x||^2, eps^2)) — rsqrt goes to the EUP.
    zr = zr_ref[...]
    zc = zc_ref[...]
    zr = zr * jax.lax.rsqrt(
        jnp.maximum(jnp.sum(zr * zr, axis=1, keepdims=True), jnp.float32(1e-24)))
    zc = zc * jax.lax.rsqrt(
        jnp.maximum(jnp.sum(zc * zc, axis=1, keepdims=True), jnp.float32(1e-24)))

    # (TM, TN) similarity logits on the MXU; 1/temperature folded into one mul.
    sim = jax.lax.dot_general(zr, zc, (((1,), (1,)), ((), ())),
                              preferred_element_type=jnp.float32)
    sim = sim * jnp.float32(inv_t)

    # Tile-local validity mask: exclude the diagonal and padded columns.
    row_ids = i * tm + jax.lax.broadcasted_iota(jnp.int32, (tm, tn), 0)
    col_ids = j * tn + jax.lax.broadcasted_iota(jnp.int32, (tm, tn), 1)
    valid = (row_ids != col_ids) & (col_ids < m_true)

    # Online (flash-style) logsumexp over valid columns.
    neg_big = jnp.float32(-1e30)
    tile_max = jnp.max(jnp.where(valid, sim, neg_big), axis=1, keepdims=True)
    m_prev = m_scr[...]
    m_new = jnp.maximum(m_prev, tile_max)
    alpha = jnp.exp(m_prev - m_new)
    p = jnp.where(valid, jnp.exp(sim - m_new), jnp.float32(0.0))
    l_scr[...] = alpha * l_scr[...] + jnp.sum(p, axis=1, keepdims=True)
    m_scr[...] = m_new

    # Raw RBF weights (no_grad path): exp of the precomputed folded exponent.
    w_raw = jnp.where(valid, jnp.exp(e_ref[...]), jnp.float32(0.0))
    sw_scr[...] = sw_scr[...] + jnp.sum(w_raw, axis=1, keepdims=True)
    swsim_scr[...] = swsim_scr[...] + jnp.sum(w_raw * sim, axis=1, keepdims=True)

    @pl.when(j == nj - 1)
    def _finalize():
        # per_row = -sum_j (w_raw/(S_w+eps)) * (sim - LSE)
        #         = (S_w * LSE - sum_j w_raw*sim) / (S_w + eps)
        lse = m_scr[...] + jnp.log(l_scr[...])
        sw = sw_scr[...]
        out_ref[...] = (sw * lse - swsim_scr[...]) / (sw + jnp.float32(1e-12))


def haversine_rbf_ntxent_loss(z_i, z_j, coords, *, temperature=0.1, sigma=0.05,
                              max_d=MAX_DISTANCE, R=R_EARTH):
    z_i = jnp.asarray(z_i, jnp.float32)
    z_j = jnp.asarray(z_j, jnp.float32)
    coords = jnp.asarray(coords, jnp.float32)

    N, D = z_i.shape
    M = 2 * N
    z = jnp.concatenate([z_i, z_j], axis=0)                     # (2N, D)

    # Lane-dense padding: M, D up to multiples of the tile / 128.
    tile = 256 if M > 1024 else 128
    Mp = _round_up(M, tile)
    Dp = _round_up(D, 128)
    z_p = jnp.pad(z, ((0, Mp - M), (0, Dp - D)))                # zero rows/cols

    coords2 = jnp.concatenate([coords, coords], axis=0)         # (2N, 2)
    coords_p = jnp.pad(coords2, ((0, Mp - M), (0, 0)))

    # ---- no_grad haversine -> folded RBF exponent (plain JAX glue) ----------
    lat = jnp.deg2rad(coords_p[:, 0])[:, None]
    lon = jnp.deg2rad(coords_p[:, 1])[:, None]
    dlat = lat - lat.T
    dlon = lon - lon.T
    a = jnp.sin(dlat * 0.5) ** 2 + jnp.cos(lat) * jnp.cos(lat.T) * jnp.sin(dlon * 0.5) ** 2
    a = jnp.clip(a, 0.0, 1.0)          # float error can push a past 1 -> NaN sqrt
    c = 2.0 * jnp.arctan2(jnp.sqrt(a), jnp.sqrt(1.0 - a))
    d = jnp.float32(R) * c
    neg_k = -1.0 / (2.0 * sigma * sigma * max_d * max_d)        # fold 1/max_d^2, 1/(2s^2)
    e_mat = (d * d) * jnp.float32(neg_k)                        # exp(e_mat) = raw RBF weight

    grid = (Mp // tile, Mp // tile)
    kernel = functools.partial(_loss_kernel, inv_t=1.0 / temperature, m_true=M)

    per_row = pl.pallas_call(
        kernel,
        out_shape=jax.ShapeDtypeStruct((Mp, 1), jnp.float32),
        grid_spec=pltpu.PrefetchScalarGridSpec(
            num_scalar_prefetch=0,
            grid=grid,
            in_specs=[
                pl.BlockSpec((tile, Dp), lambda i, j: (i, 0)),     # row block of z
                pl.BlockSpec((tile, Dp), lambda i, j: (j, 0)),     # col block of z
                pl.BlockSpec((tile, tile), lambda i, j: (i, j)),   # RBF exponent tile
            ],
            out_specs=pl.BlockSpec((tile, 1), lambda i, j: (i, 0)),
            scratch_shapes=[pltpu.VMEM((tile, 1), jnp.float32)] * 4,
        ),
        compiler_params=pltpu.CompilerParams(
            dimension_semantics=("parallel", "arbitrary"),
            vmem_limit_bytes=64 * 1024 * 1024),
    )(z_p, z_p, e_mat)

    # Padded rows are finite garbage; keep only the true 2N rows, divide by 2N.
    return jnp.sum(per_row[:M, 0]) / jnp.float32(M)


def reference_loss_numpy(z_i, z_j, coords, temperature=0.1, sigma=0.05,
                         max_d=MAX_DISTANCE, R=R_EARTH):
    """Pure numpy mirror of the PyTorch forward (for validation)."""
    z_i = np.asarray(z_i, np.float32)
    z_j = np.asarray(z_j, np.float32)
    coords = np.asarray(coords, np.float32)
    N = z_i.shape[0]

    def normalize(x):
        n = np.sqrt((x * x).sum(axis=1, keepdims=True))
        return x / np.maximum(n, 1e-12)

    z_i = normalize(z_i)
    z_j = normalize(z_j)
    sim_ii = z_i @ z_i.T / temperature
    sim_jj = z_j @ z_j.T / temperature
    sim_ij = z_i @ z_j.T / temperature
    mask = ~np.eye(N, dtype=bool)
    sim_ii = sim_ii[mask].reshape(N, N - 1)
    sim_jj = sim_jj[mask].reshape(N, N - 1)
    top = np.concatenate([sim_ii, sim_ij], axis=1)
    bottom = np.concatenate([sim_ij.T, sim_jj], axis=1)
    logits = np.concatenate([top, bottom], axis=0)

    coords2 = np.concatenate([coords, coords], axis=0)
    lat = np.deg2rad(coords2[:, 0])[:, None]
    lon = np.deg2rad(coords2[:, 1])[:, None]
    dlat = lat - lat.T
    dlon = lon - lon.T
    a = np.sin(dlat / 2) ** 2 + np.cos(lat) * np.cos(lat.T) * np.sin(dlon / 2) ** 2
    a = np.clip(a, 0.0, 1.0)
    c = 2 * np.arctan2(np.sqrt(a), np.sqrt(1 - a))
    d_mat = R * c
    sim_mat = np.exp(-((d_mat / max_d) ** 2) / (2 * sigma ** 2))
    mask2 = ~np.eye(2 * N, dtype=bool)
    w = sim_mat[mask2].reshape(2 * N, 2 * N - 1)
    w = w / (w.sum(axis=1, keepdims=True) + 1e-12)

    m = logits.max(axis=1, keepdims=True)
    logp = (logits - m) - np.log(np.exp(logits - m).sum(axis=1, keepdims=True))
    return float((-(w * logp).sum(axis=1)).mean())


if __name__ == "__main__":
    key = jax.random.PRNGKey(0)

    def make_inputs(k, N, D):
        k1, k2, k3, k4 = jax.random.split(k, 4)
        z_i = jax.random.normal(k1, (N, D), dtype=jnp.float32)
        z_j = jax.random.normal(k2, (N, D), dtype=jnp.float32)
        lat = jax.random.uniform(k3, (N, 1), minval=-90.0, maxval=90.0, dtype=jnp.float32)
        lon = jax.random.uniform(k4, (N, 1), minval=-180.0, maxval=180.0, dtype=jnp.float32)
        return z_i, z_j, jnp.concatenate([lat, lon], axis=1)

    # (8, 32): single 128x128 tile after padding (grid 1x1).
    # (72, 64): M=144 -> Mp=256, grid 2x2 — exercises multi-tile online softmax,
    #           diagonal tiles and padded-column masking.
    for (N, D) in [(8, 32), (72, 64)]:
        k, key = jax.random.split(key)
        z_i, z_j, coords = make_inputs(k, N, D)
        loss = jax.block_until_ready(haversine_rbf_ntxent_loss(z_i, z_j, coords))
        ref = reference_loss_numpy(z_i, z_j, coords)
        if not np.isfinite(float(loss)):
            raise RuntimeError(f"N={N} D={D}: non-finite loss: {loss}")
        if not np.allclose(float(loss), ref, rtol=1e-3, atol=1e-3):
            raise RuntimeError(f"N={N} D={D}: mismatch pallas={float(loss)} ref={ref}")

    print("KERNEL_OK")
</pallas_src>

<mosaic_0001>
module attributes {stable_mosaic.version = 11 : i64} {
  func.func @_loss_kernel(%arg0: i32, %arg1: i32, %arg2: memref<128x128xf32, #tpu.memory_space<vmem>>, %arg3: memref<128x128xf32, #tpu.memory_space<vmem>>, %arg4: memref<128x128xf32, #tpu.memory_space<vmem>>, %arg5: memref<128x1xf32, #tpu.memory_space<vmem>>, %arg6: memref<128x1xf32, #tpu.memory_space<vmem>>, %arg7: memref<128x1xf32, #tpu.memory_space<vmem>>, %arg8: memref<128x1xf32, #tpu.memory_space<vmem>>, %arg9: memref<128x1xf32, #tpu.memory_space<vmem>>) attributes {dimension_semantics = [#tpu.dimension_semantics<parallel>, #tpu.dimension_semantics<arbitrary>], iteration_bounds = array<i64: 1, 1>, scalar_prefetch = 0 : i64, scratch_operands = 4 : i64, tpu.core_type = #tpu.core_type<tc>, window_params = [{transform_indices = @transform_0, window_bounds = array<i64: 128, 128>}, {transform_indices = @transform_1, window_bounds = array<i64: 128, 128>}, {transform_indices = @transform_2, window_bounds = array<i64: 128, 128>}, {transform_indices = @transform_3, window_bounds = array<i64: 128, 1>}]} {
    %c0_i32 = arith.constant 0 : i32
    %0 = arith.cmpi eq, %arg1, %c0_i32 : i32
    %1 = arith.extui %0 : i1 to i32
    %c0_i32_0 = arith.constant 0 : i32
    %2 = arith.cmpi ne, %1, %c0_i32_0 : i32
    scf.if %2 {
      %cst_37 = arith.constant 0xFF800000 : f32
      %74 = vector.broadcast %cst_37 : f32 to vector<128x1xf32>
      %c0_38 = arith.constant 0 : index
      %c0_39 = arith.constant 0 : index
      %75 = vector.load %arg6[%c0_38, %c0_39] : memref<128x1xf32, #tpu.memory_space<vmem>>, vector<128x1xf32>
      tpu.vector_store %arg6[%c0_38, %c0_39], %74 {strides = array<i32>} : memref<128x1xf32, #tpu.memory_space<vmem>>, vector<128x1xf32>,
      %cst_40 = arith.constant 0.000000e+00 : f32
      %76 = vector.broadcast %cst_40 : f32 to vector<128x1xf32>
      %c0_41 = arith.constant 0 : index
      %c0_42 = arith.constant 0 : index
      %77 = vector.load %arg7[%c0_41, %c0_42] : memref<128x1xf32, #tpu.memory_space<vmem>>, vector<128x1xf32>
      tpu.vector_store %arg7[%c0_41, %c0_42], %76 {strides = array<i32>} : memref<128x1xf32, #tpu.memory_space<vmem>>, vector<128x1xf32>,
      %cst_43 = arith.constant 0.000000e+00 : f32
      %78 = vector.broadcast %cst_43 : f32 to vector<128x1xf32>
      %c0_44 = arith.constant 0 : index
      %c0_45 = arith.constant 0 : index
      %79 = vector.load %arg8[%c0_44, %c0_45] : memref<128x1xf32, #tpu.memory_space<vmem>>, vector<128x1xf32>
      tpu.vector_store %arg8[%c0_44, %c0_45], %78 {strides = array<i32>} : memref<128x1xf32, #tpu.memory_space<vmem>>, vector<128x1xf32>,
      %cst_46 = arith.constant 0.000000e+00 : f32
      %80 = vector.broadcast %cst_46 : f32 to vector<128x1xf32>
      %c0_47 = arith.constant 0 : index
      %c0_48 = arith.constant 0 : index
      %81 = vector.load %arg9[%c0_47, %c0_48] : memref<128x1xf32, #tpu.memory_space<vmem>>, vector<128x1xf32>
      tpu.vector_store %arg9[%c0_47, %c0_48], %80 {strides = array<i32>} : memref<128x1xf32, #tpu.memory_space<vmem>>, vector<128x1xf32>,
    } else {
    }
    %c0 = arith.constant 0 : index
    %c0_1 = arith.constant 0 : index
    %3 = vector.load %arg2[%c0, %c0_1] : memref<128x128xf32, #tpu.memory_space<vmem>>, vector<128x128xf32>
    %c0_2 = arith.constant 0 : index
    %c0_3 = arith.constant 0 : index
    %4 = vector.load %arg3[%c0_2, %c0_3] : memref<128x128xf32, #tpu.memory_space<vmem>>, vector<128x128xf32>
    %5 = arith.mulf %3, %3 : vector<128x128xf32>
    %cst = arith.constant dense<0.000000e+00> : vector<128xf32>
    %6 = vector.multi_reduction <add>, %5, %cst [1] : vector<128x128xf32> to vector<128xf32>
    %7 = vector.shape_cast %6 : vector<128xf32> to vector<128x1xf32>
    %cst_4 = arith.constant 1.000000e-24 : f32
    %8 = vector.broadcast %cst_4 : f32 to vector<128x1xf32>
    %9 = arith.maximumf %7, %8 : vector<128x1xf32>
    %10 = math.rsqrt %9 : vector<128x1xf32>
    %11 = vector.broadcast %10 : vector<128x1xf32> to vector<128x128xf32>
    %12 = arith.mulf %3, %11 : vector<128x128xf32>
    %13 = arith.mulf %4, %4 : vector<128x128xf32>
    %cst_5 = arith.constant dense<0.000000e+00> : vector<128xf32>
    %14 = vector.multi_reduction <add>, %13, %cst_5 [1] : vector<128x128xf32> to vector<128xf32>
    %15 = vector.shape_cast %14 : vector<128xf32> to vector<128x1xf32>
    %cst_6 = arith.constant 1.000000e-24 : f32
    %16 = vector.broadcast %cst_6 : f32 to vector<128x1xf32>
    %17 = arith.maximumf %15, %16 : vector<128x1xf32>
    %18 = math.rsqrt %17 : vector<128x1xf32>
    %19 = vector.broadcast %18 : vector<128x1xf32> to vector<128x128xf32>
    %20 = arith.mulf %4, %19 : vector<128x128xf32>
    %cst_7 = arith.constant dense<0.000000e+00> : vector<128x128xf32>
    %21 = tpu.matmul %12, %20, %cst_7 {dimension_numbers = #tpu.dot_dimension_numbers<[1], [1], [0], [0], [0, 0, 1, 0], [], []>} : vector<128x128xf32>, vector<128x128xf32>, vector<128x128xf32> -> vector<128x128xf32>
    %cst_8 = arith.constant 1.000000e+01 : f32
    %22 = vector.broadcast %cst_8 : f32 to vector<128x128xf32>
    %23 = arith.mulf %21, %22 : vector<128x128xf32>
    %c128_i32 = arith.constant 128 : i32
    %24 = arith.muli %arg0, %c128_i32 : i32
    %25 = tpu.iota {dimensions = array<i32: 0>} : vector<128x128xi32>
    %26 = vector.broadcast %24 : i32 to vector<128x128xi32>
    %27 = arith.addi %26, %25 : vector<128x128xi32>
    %c128_i32_9 = arith.constant 128 : i32
    %28 = arith.muli %arg1, %c128_i32_9 : i32
    %29 = tpu.iota {dimensions = array<i32: 1>} : vector<128x128xi32>
    %30 = vector.broadcast %28 : i32 to vector<128x128xi32>
    %31 = arith.addi %30, %29 : vector<128x128xi32>
    %32 = arith.cmpi ne, %27, %31 : vector<128x128xi32>
    %c16_i32 = arith.constant 16 : i32
    %33 = vector.broadcast %c16_i32 : i32 to vector<128x128xi32>
    %34 = arith.cmpi slt, %31, %33 : vector<128x128xi32>
    %35 = arith.andi %32, %34 : vector<128x128xi1>
    %cst_10 = arith.constant -1.000000e+30 : f32
    %36 = vector.broadcast %cst_10 : f32 to vector<128x128xf32>
    %37 = arith.select %35, %23, %36 : vector<128x128xi1>, vector<128x128xf32>
    %cst_11 = arith.constant dense<0xFF800000> : vector<128xf32>
    %38 = vector.multi_reduction <maximumf>, %37, %cst_11 [1] : vector<128x128xf32> to vector<128xf32>
    %39 = vector.shape_cast %38 : vector<128xf32> to vector<128x1xf32>
    %c0_12 = arith.constant 0 : index
    %c0_13 = arith.constant 0 : index
    %40 = vector.load %arg6[%c0_12, %c0_13] : memref<128x1xf32, #tpu.memory_space<vmem>>, vector<128x1xf32>
    %41 = arith.maximumf %40, %39 : vector<128x1xf32>
    %42 = arith.subf %40, %41 : vector<128x1xf32>
    %43 = math.exp %42 : vector<128x1xf32>
    %44 = vector.broadcast %41 : vector<128x1xf32> to vector<128x128xf32>
    %45 = arith.subf %23, %44 : vector<128x128xf32>
    %46 = math.exp %45 : vector<128x128xf32>
    %cst_14 = arith.constant 0.000000e+00 : f32
    %47 = vector.broadcast %cst_14 : f32 to vector<128x128xf32>
    %48 = arith.select %35, %46, %47 : vector<128x128xi1>, vector<128x128xf32>
    %c0_15 = arith.constant 0 : index
    %c0_16 = arith.constant 0 : index
    %49 = vector.load %arg7[%c0_15, %c0_16] : memref<128x1xf32, #tpu.memory_space<vmem>>, vector<128x1xf32>
    %50 = arith.mulf %43, %49 : vector<128x1xf32>
    %cst_17 = arith.constant dense<0.000000e+00> : vector<128xf32>
    %51 = vector.multi_reduction <add>, %48, %cst_17 [1] : vector<128x128xf32> to vector<128xf32>
    %52 = vector.shape_cast %51 : vector<128xf32> to vector<128x1xf32>
    %53 = arith.addf %50, %52 : vector<128x1xf32>
    %c0_18 = arith.constant 0 : index
    %c0_19 = arith.constant 0 : index
    %54 = vector.load %arg7[%c0_18, %c0_19] : memref<128x1xf32, #tpu.memory_space<vmem>>, vector<128x1xf32>
    tpu.vector_store %arg7[%c0_18, %c0_19], %53 {strides = array<i32>} : memref<128x1xf32, #tpu.memory_space<vmem>>, vector<128x1xf32>,
    %c0_20 = arith.constant 0 : index
    %c0_21 = arith.constant 0 : index
    %55 = vector.load %arg6[%c0_20, %c0_21] : memref<128x1xf32, #tpu.memory_space<vmem>>, vector<128x1xf32>
    tpu.vector_store %arg6[%c0_20, %c0_21], %41 {strides = array<i32>} : memref<128x1xf32, #tpu.memory_space<vmem>>, vector<128x1xf32>,
    %c0_22 = arith.constant 0 : index
    %c0_23 = arith.constant 0 : index
    %56 = vector.load %arg4[%c0_22, %c0_23] : memref<128x128xf32, #tpu.memory_space<vmem>>, vector<128x128xf32>
    %57 = math.exp %56 : vector<128x128xf32>
    %cst_24 = arith.constant 0.000000e+00 : f32
    %58 = vector.broadcast %cst_24 : f32 to vector<128x128xf32>
    %59 = arith.select %35, %57, %58 : vector<128x128xi1>, vector<128x128xf32>
    %c0_25 = arith.constant 0 : index
    %c0_26 = arith.constant 0 : index
    %60 = vector.load %arg8[%c0_25, %c0_26] : memref<128x1xf32, #tpu.memory_space<vmem>>, vector<128x1xf32>
    %cst_27 = arith.constant dense<0.000000e+00> : vector<128xf32>
    %61 = vector.multi_reduction <add>, %59, %cst_27 [1] : vector<128x128xf32> to vector<128xf32>
    %62 = vector.shape_cast %61 : vector<128xf32> to vector<128x1xf32>
    %63 = arith.addf %60, %62 : vector<128x1xf32>
    %c0_28 = arith.constant 0 : index
    %c0_29 = arith.constant 0 : index
    %64 = vector.load %arg8[%c0_28, %c0_29] : memref<128x1xf32, #tpu.memory_space<vmem>>, vector<128x1xf32>
    tpu.vector_store %arg8[%c0_28, %c0_29], %63 {strides = array<i32>} : memref<128x1xf32, #tpu.memory_space<vmem>>, vector<128x1xf32>,
    %c0_30 = arith.constant 0 : index
    %c0_31 = arith.constant 0 : index
    %65 = vector.load %arg9[%c0_30, %c0_31] : memref<128x1xf32, #tpu.memory_space<vmem>>, vector<128x1xf32>
    %66 = arith.mulf %59, %23 : vector<128x128xf32>
    %cst_32 = arith.constant dense<0.000000e+00> : vector<128xf32>
    %67 = vector.multi_reduction <add>, %66, %cst_32 [1] : vector<128x128xf32> to vector<128xf32>
    %68 = vector.shape_cast %67 : vector<128xf32> to vector<128x1xf32>
    %69 = arith.addf %65, %68 : vector<128x1xf32>
    %c0_33 = arith.constant 0 : index
    %c0_34 = arith.constant 0 : index
    %70 = vector.load %arg9[%c0_33, %c0_34] : memref<128x1xf32, #tpu.memory_space<vmem>>, vector<128x1xf32>
    tpu.vector_store %arg9[%c0_33, %c0_34], %69 {strides = array<i32>} : memref<128x1xf32, #tpu.memory_space<vmem>>, vector<128x1xf32>,
    %c0_i32_35 = arith.constant 0 : i32
    %71 = arith.cmpi eq, %arg1, %c0_i32_35 : i32
    %72 = arith.extui %71 : i1 to i32
    %c0_i32_36 = arith.constant 0 : i32
    %73 = arith.cmpi ne, %72, %c0_i32_36 : i32
    scf.if %73 {
      %c0_37 = arith.constant 0 : index
      %c0_38 = arith.constant 0 : index
      %74 = vector.load %arg6[%c0_37, %c0_38] : memref<128x1xf32, #tpu.memory_space<vmem>>, vector<128x1xf32>
      %c0_39 = arith.constant 0 : index
      %c0_40 = arith.constant 0 : index
      %75 = vector.load %arg7[%c0_39, %c0_40] : memref<128x1xf32, #tpu.memory_space<vmem>>, vector<128x1xf32>
      %76 = math.log %75 : vector<128x1xf32>
      %77 = arith.addf %74, %76 : vector<128x1xf32>
      %c0_41 = arith.constant 0 : index
      %c0_42 = arith.constant 0 : index
      %78 = vector.load %arg8[%c0_41, %c0_42] : memref<128x1xf32, #tpu.memory_space<vmem>>, vector<128x1xf32>
      %79 = arith.mulf %78, %77 : vector<128x1xf32>
      %c0_43 = arith.constant 0 : index
      %c0_44 = arith.constant 0 : index
      %80 = vector.load %arg9[%c0_43, %c0_44] : memref<128x1xf32, #tpu.memory_space<vmem>>, vector<128x1xf32>
      %81 = arith.subf %79, %80 : vector<128x1xf32>
      %cst_45 = arith.constant 9.99999996E-13 : f32
      %82 = vector.broadcast %cst_45 : f32 to vector<128x1xf32>
      %83 = arith.addf %78, %82 : vector<128x1xf32>
      %84 = arith.divf %81, %83 : vector<128x1xf32>
      %c0_46 = arith.constant 0 : index
      %c0_47 = arith.constant 0 : index
      %85 = vector.load %arg5[%c0_46, %c0_47] : memref<128x1xf32, #tpu.memory_space<vmem>>, vector<128x1xf32>
      tpu.vector_store %arg5[%c0_46, %c0_47], %84 {strides = array<i32>} : memref<128x1xf32, #tpu.memory_space<vmem>>, vector<128x1xf32>,
    } else {
    }
    return
  }
  func.func @transform_0(%arg0: i32, %arg1: i32) -> (i32, i32) {
    %c0_i32 = arith.constant 0 : i32
    %c0_i32_0 = arith.constant 0 : i32
    return %arg0, %c0_i32 : i32, i32
  }
  func.func @transform_1(%arg0: i32, %arg1: i32) -> (i32, i32) {
    %c0_i32 = arith.constant 0 : i32
    %c0_i32_0 = arith.constant 0 : i32
    return %arg1, %c0_i32 : i32, i32
  }
  func.func @transform_2(%arg0: i32, %arg1: i32) -> (i32, i32) {
    %c0_i32 = arith.constant 0 : i32
    return %arg0, %arg1 : i32, i32
  }
  func.func @transform_3(%arg0: i32, %arg1: i32) -> (i32, i32) {
    %c0_i32 = arith.constant 0 : i32
    %c0_i32_0 = arith.constant 0 : i32
    return %arg0, %c0_i32 : i32, i32
  }
}

</mosaic_0001>

<bundles_post_ra>
// kernel: tpu_custom_call.1
= control target key start
LH: loop header
LB: loop body
LE: loop exit
PB: predicated region body
PF: predicated region fallthrough
CT: control target
= control target key end

     0   :  { %8 = vsyncpa [#allocation7], 0  ;;  %s2936_s0 = inlined_call_operand.hbm [shape: f32[128,128], index: 0, kind: input, shape index: {}]   ;;  %s2937_s1 = inlined_call_operand.hbm [shape: f32[128,128], index: 1, kind: input, shape index: {}]   ;;  %s2938_s2 = inlined_call_operand.hbm [shape: f32[128,128], index: 2, kind: input, shape index: {}]   ;;  %s2939_s3 = inlined_call_operand.hbm [shape: f32[128,1], index: 3, kind: output, shape index: {}]  }
   0x1   :  { %9 = vsyncpa [#allocation10], 0 }
   0x2   :  { %10 = vsyncpa [#allocation8], 0  ;;  %s1902_s12 = smov [#allocation9]   ;;  %s1903_s14 = smov [#allocation6]  }
   0x3   :  { %s28_s13 = sshll.u32 %s1902_s12, 4  ;;  %s16_s15 = sshll.u32 %s1903_s14, 4  ;;  %s29_s13 = int_to_ptr.vmem [resolvable:$true] %s28_s13  ;;  %s1931_s15 = int_to_ptr.vmem [resolvable:$true] %s16_s15 }
   0x4   :  { %s1808_s18 = scalar_lea.hbm %s2937_s1, 2048 }
   0x5   :  { %p1809_p0 = scmp.ne.s32.totalorder %s2937_s1, %s1808_s18  ;;  %p1812_p1 = scmp.lt.u32.totalorder %s1808_s18, %s2937_s1 }
   0x7   :  { %p1814_p2 = pnand %p1812_p1, %p1809_p0 }
   0x9   :  { %1817 = shalt.err (!%p1814_p2)
}
   0xa   :  { %s1818_s23 = scalar_lea.vmem %s29_s13, 2048  ;;  %p1823_p4 = scmp.lt.s32.totalorder %s29_s13, %s29_s13 }
   0xb   :  { %p1819_p3 = scmp.ne.s32.totalorder %s29_s13, %s1818_s23  ;;  %p1824_p5 = scmp.lt.s32.totalorder %s1818_s23, %s1818_s23 }
   0xd   :  { %p1825_p6 = por %p1824_p5, %p1823_p4 }
   0xf   :  { %p1826_p7 = pnand %p1825_p6, %p1819_p3 }
  0x11   :  { %1829 = shalt.err (!%p1826_p7)
}
  0x12   :  { %s1904_s24 = smov 128   ;;  %s1905_s25 = smov 8  }
  0x13   :  { %34 = dma.hbm_to_vmem [thread:$0]  %s2937_s1, 2048, %s29_s13, [#allocation10], %s1904_s24, %s1904_s24, %s1905_s25  }
  0x14   :  { %s1830_s30 = scalar_lea.hbm %s2936_s0, 2048 }
  0x15   :  { %p1831_p8 = scmp.ne.s32.totalorder %s2936_s0, %s1830_s30  ;;  %p1834_p9 = scmp.lt.u32.totalorder %s1830_s30, %s2936_s0 }
  0x17   :  { %p1836_p10 = pnand %p1834_p9, %p1831_p8 }
  0x19   :  { %1839 = shalt.err (!%p1836_p10)
}
  0x1a   :  { %s1840_s8 = scalar_lea.vmem %s1931_s15, 2048  ;;  %p1845_p12 = scmp.lt.s32.totalorder %s1931_s15, %s1931_s15 }
  0x1b   :  { %p1841_p11 = scmp.ne.s32.totalorder %s1931_s15, %s1840_s8  ;;  %p1846_p13 = scmp.lt.s32.totalorder %s1840_s8, %s1840_s8 }
  0x1d   :  { %p1847_p0 = por %p1846_p13, %p1845_p12 }
  0x1f   :  { %p1848_p1 = pnand %p1847_p0, %p1841_p11 }
  0x21   :  { %1851 = shalt.err (!%p1848_p1)
}
  0x22   :  { %22 = dma.hbm_to_vmem [thread:$0]  %s2936_s0, 2048, %s1931_s15, [#allocation7], %s1904_s24, %s1904_s24, %s1905_s25  }
  0x23   :  { %s1906_s10 = smov [#allocation11]   ;;  %s1852_s14 = scalar_lea.hbm %s2938_s2, 2048 }
  0x24   :  { %s40_s11 = sshll.u32 %s1906_s10, 4  ;;  %p1853_p2 = scmp.ne.s32.totalorder %s2938_s2, %s1852_s14  ;;  %s41_s11 = int_to_ptr.vmem [resolvable:$true] %s40_s11 }
  0x25   :  { %p1856_p3 = scmp.lt.u32.totalorder %s1852_s14, %s2938_s2 }
  0x27   :  { %p1858_p4 = pnand %p1856_p3, %p1853_p2 }
  0x29   :  { %1861 = shalt.err (!%p1858_p4)
}
  0x2a   :  { %s1862_s20 = scalar_lea.vmem %s41_s11, 2048  ;;  %p1867_p6 = scmp.lt.s32.totalorder %s41_s11, %s41_s11 }
  0x2b   :  { %p1863_p5 = scmp.ne.s32.totalorder %s41_s11, %s1862_s20  ;;  %p1868_p7 = scmp.lt.s32.totalorder %s1862_s20, %s1862_s20 }
  0x2d   :  { %p1869_p8 = por %p1868_p7, %p1867_p6 }
  0x2f   :  { %p1870_p9 = pnand %p1869_p8, %p1863_p5 }
  0x31   :  { %1873 = shalt.err (!%p1870_p9)
}
  0x32   :  { %46 = dma.hbm_to_vmem [thread:$0]  %s2938_s2, 2048, %s41_s11, [#allocation10], %s1904_s24, %s1904_s24, %s1905_s25  }
  0x33   :  { %1896 = dma.done.wait [#allocation7], 2048  }
  0x34   :  { %1897 = vsyncadd [#allocation7], 4294965248 }
  0x35   :  { %1898 = dma.done.wait [#allocation10], 4096  }
  0x36   :  { %1899 = vsyncadd [#allocation10], 4294963200  ;;  %v1983_v0 = vld [vmem:[#allocation9] sm:$0xff]  ;;  %v1985_v1 = vld [vmem:[#allocation9 + $0x10] sm:$0xff]  ;;  %vm2941_vm9 = vcmask 7168   ;;  %s1910_s2 = smov [#allocation12]  }
  0x37   :  { %v1987_v2 = vld [vmem:[#allocation9 + $0x8] sm:$0xff]  ;;  %v253_v3 = vmul.f32 %v1983_v0, %v1983_v0  ;;  %v255_v4 = vmul.f32 %v1985_v1, %v1985_v1  ;;  %v1993_v5 = vld [vmem:[#allocation9 + $0x18] sm:$0xff]  ;;  %v2001_v9 = vld [vmem:[#allocation9 + $0x20] sm:$0xff]  ;;  %s1424_s21 = sshll.u32 %s1910_s2, 4  ;;  %s1425_s21 = int_to_ptr.vmem [resolvable:$true] %s1424_s21 }
  0x38   :  { %v254_v6 = vmul.f32 %v1987_v2, %v1987_v2  ;;  %v256_v7 = vmul.f32 %v1993_v5, %v1993_v5  ;;  %v1999_v8 = vld [vmem:[#allocation9 + $0x28] sm:$0xff]  ;;  %v257_v11 = vmul.f32 %v2001_v9, %v2001_v9  ;;  %v2007_v12 = vld [vmem:[#allocation9 + $0x38] sm:$0xff]  ;;  %v2009_v13 = vld [vmem:[#allocation9 + $0x30] sm:$0xff]  ;;  %s1874_s22 = scalar_lea.vmem %s1425_s21, 2048  ;;  %p1879_p11 = scmp.lt.s32.totalorder %s1425_s21, %s1425_s21 }
  0x39   :  { %269 = vadd.xlane.f32.xlu0 %v253_v3  ;;  %273 = vadd.xlane.f32.xlu1 %v255_v4  ;;  %v258_v10 = vmul.f32 %v1999_v8, %v1999_v8  ;;  %v260_v14 = vmul.f32 %v2007_v12, %v2007_v12  ;;  %v259_v15 = vmul.f32 %v2009_v13, %v2009_v13  ;;  %v2015_v16 = vld [vmem:[#allocation9 + $0x48] sm:$0xff]  ;;  %v2017_v17 = vld [vmem:[#allocation9 + $0x40] sm:$0xff]  ;;  %v2023_v20 = vld [vmem:[#allocation9 + $0x58] sm:$0xff]  ;;  %v511_v3 = vlaneseq  ;;  %p1875_p10 = scmp.ne.s32.totalorder %s1425_s21, %s1874_s22  ;;  %p1880_p12 = scmp.lt.s32.totalorder %s1874_s22, %s1874_s22 }
  0x3a   :  { %v262_v18 = vmul.f32 %v2015_v16, %v2015_v16  ;;  %v261_v19 = vmul.f32 %v2017_v17, %v2017_v17  ;;  %v2025_v21 = vld [vmem:[#allocation9 + $0x50] sm:$0xff]  ;;  %v264_v22 = vmul.f32 %v2023_v20, %v2023_v20  ;;  %v2031_v24 = vld [vmem:[#allocation9 + $0x68] sm:$0xff]  ;;  %v2033_v25 = vld [vmem:[#allocation9 + $0x60] sm:$0xff] }
  0x3b   :  { %v263_v23 = vmul.f32 %v2025_v21, %v2025_v21  ;;  %v266_v26 = vmul.f32 %v2031_v24, %v2031_v24  ;;  %v265_v27 = vmul.f32 %v2033_v25, %v2033_v25  ;;  %v2039_v28 = vld [vmem:[#allocation9 + $0x78] sm:$0xff]  ;;  %v2041_v29 = vld [vmem:[#allocation9 + $0x70] sm:$0xff]  ;;  %v2047_v32 = vld [vmem:[#allocation6] sm:$0xff]  ;;  %p1881_p13 = por %p1880_p12, %p1879_p11 }
  0x3c   :  { %v268_v30 = vmul.f32 %v2039_v28, %v2039_v28  ;;  %v267_v31 = vmul.f32 %v2041_v29, %v2041_v29  ;;  %v2049_v33 = vld [vmem:[#allocation6 + $0x40] sm:$0xff]  ;;  %v157_v34 = vmul.f32 %v2047_v32, %v2047_v32  ;;  %v2055_v36 = vld [vmem:[#allocation6 + $0x8] sm:$0xff]  ;;  %v2063_v40 = vld [vmem:[#allocation6 + $0x10] sm:$0xff] }
  0x3d   :  { %271 = vadd.xlane.f32.xlu0 %v254_v6  ;;  %275 = vadd.xlane.f32.xlu1 %v256_v7  ;;  %v165_v35 = vmul.f32 %v2049_v33, %v2049_v33  ;;  %v2057_v37 = vld [vmem:[#allocation6 + $0x48] sm:$0xff]  ;;  %v158_v38 = vmul.f32 %v2055_v36, %v2055_v36  ;;  %v2065_v41 = vld [vmem:[#allocation6 + $0x50] sm:$0xff]  ;;  %v159_v42 = vmul.f32 %v2063_v40, %v2063_v40  ;;  %v2071_v44 = vld [vmem:[#allocation6 + $0x18] sm:$0xff]  ;;  %p1882_p0 = pnand %p1881_p13, %p1875_p10 }
  0x3e   :  { %v166_v39 = vmul.f32 %v2057_v37, %v2057_v37  ;;  %v167_v43 = vmul.f32 %v2065_v41, %v2065_v41  ;;  %v2073_v45 = vld [vmem:[#allocation6 + $0x58] sm:$0xff]  ;;  %v160_v46 = vmul.f32 %v2071_v44, %v2071_v44  ;;  %v2079_v48 = vld [vmem:[#allocation6 + $0x20] sm:$0xff]  ;;  %v2087_v52 = vld [vmem:[#allocation6 + $0x28] sm:$0xff] }
  0x3f   :  { %v168_v47 = vmul.f32 %v2073_v45, %v2073_v45  ;;  %v2081_v49 = vld [vmem:[#allocation6 + $0x60] sm:$0xff]  ;;  %v161_v50 = vmul.f32 %v2079_v48, %v2079_v48  ;;  %v2089_v53 = vld [vmem:[#allocation6 + $0x68] sm:$0xff]  ;;  %v162_v54 = vmul.f32 %v2087_v52, %v2087_v52  ;;  %v2095_v56 = vld [vmem:[#allocation6 + $0x30] sm:$0xff] }
  0x40   :  { %v169_v51 = vmul.f32 %v2081_v49, %v2081_v49  ;;  %v170_v55 = vmul.f32 %v2089_v53, %v2089_v53  ;;  %v2097_v57 = vld [vmem:[#allocation6 + $0x70] sm:$0xff]  ;;  %v163_v58 = vmul.f32 %v2095_v56, %v2095_v56  ;;  %v2103_v60 = vld [vmem:[#allocation6 + $0x38] sm:$0xff]  ;;  %v969_v4 = vld [vmem:[#allocation11 + $0x8] sm:$0xff] }
  0x41   :  { %279 = vadd.xlane.f32.xlu1 %v258_v10  ;;  %277 = vadd.xlane.f32.xlu0 %v257_v11  ;;  %v171_v59 = vmul.f32 %v2097_v57, %v2097_v57  ;;  %v2105_v61 = vld [vmem:[#allocation6 + $0x78] sm:$0xff]  ;;  %v164_v62 = vmul.f32 %v2103_v60, %v2103_v60  ;;  %v968_v6 = vld [vmem:[#allocation11] sm:$0xff]  ;;  %v986_v10 = vmul.f32 1.442695, %v969_v4 }
  0x42   :  { %v172_v63 = vmul.f32 %v2105_v61, %v2105_v61  ;;  %v971_v7 = vld [vmem:[#allocation11 + $0x18] sm:$0xff]  ;;  %v984_v11 = vmul.f32 1.442695, %v968_v6 }
  0x43   :  { %1584 = vpow2.f32 %v986_v10 }
  0x44   :  { %1586 = vpow2.f32 %v984_v11 }
  0x45   :  { %283 = vadd.xlane.f32.xlu1 %v260_v14  ;;  %281 = vadd.xlane.f32.xlu0 %v259_v15  ;;  %v990_v14 = vmul.f32 1.442695, %v971_v7  ;;  %v2111_v15 = vshrl.u32 %v511_v3, 7 }
  0x47   :  { %1588 = vpow2.f32 %v990_v14 }
  0x49   :  { %287 = vadd.xlane.f32.xlu1 %v262_v18  ;;  %285 = vadd.xlane.f32.xlu0 %v261_v19  ;;  %v513_v18 = vadd.s32 8, %v2111_v15  ;;  %v2114_v19 = vand.u32 127, %v511_v3 }
  0x4b   :  { %vm551_vm0 = vcmp.ne.s32.totalorder %v513_v18, %v2114_v19  ;;  %vm566_vm1 = vcmp.lt.s32.totalorder %v2114_v19, 16  ;;  %vm550_vm2 = vcmp.ne.s32.totalorder %v2111_v15, %v2114_v19 }
  0x4c   :  { %vm2124_vm4 = vmand %vm551_vm0, %vm566_vm1 }
  0x4d   :  { %291 = vadd.xlane.f32.xlu1 %v264_v22  ;;  %289 = vadd.xlane.f32.xlu0 %v263_v23  ;;  %v515_v22 = vadd.s32 24, %v2111_v15  ;;  %vm2130_vm5 = vmand %vm550_vm2, %vm566_vm1 }
  0x4f   :  { %vm553_vm3 = vcmp.ne.s32.totalorder %v515_v22, %v2114_v19 }
  0x50   :  { %vm2136_vm6 = vmand %vm553_vm3, %vm566_vm1 }
  0x51   :  { %295 = vadd.xlane.f32.xlu1 %v266_v26  ;;  %293 = vadd.xlane.f32.xlu0 %v265_v27  ;;  %v2970_v26 = vmov 0  ;;  %v1585_v27 = vpop.eup %1584 }
  0x52   :  { %v2971_v26 = vsel %vm2130_vm5, 4294967295, %v2970_v26 }
  0x55   :  { %299 = vadd.xlane.f32.xlu1 %v268_v30  ;;  %297 = vadd.xlane.f32.xlu0 %v267_v31  ;;  %v2972_v30 = vmov 0  ;;  %v1587_v31 = vpop.eup %1586 }
  0x56   :  { %v2973_v30 = vsel %vm2136_vm6, 4294967295, %v2972_v30 }
  0x59   :  { %173 = vadd.xlane.f32.xlu0 %v157_v34  ;;  %189 = vadd.xlane.f32.xlu1 %v165_v35  ;;  %v2142_v34 = vsel %vm2124_vm4, %v1585_v27, 0.0  ;;  %v1589_v35 = vpop.eup %1588 }
  0x5d   :  { %175 = vadd.xlane.f32.xlu0 %v158_v38  ;;  %191 = vadd.xlane.f32.xlu1 %v166_v39  ;;  %v2147_v38 = vsel %vm2130_vm5, %v1587_v31, 0.0  ;;  %v2152_v39 = vsel %vm2136_vm6, %v1589_v35, 0.0 }
  0x61   :  { %177 = vadd.xlane.f32.xlu0 %v159_v42  ;;  %193 = vadd.xlane.f32.xlu1 %v167_v43 }
  0x65   :  { %179 = vadd.xlane.f32.xlu0 %v160_v46  ;;  %195 = vadd.xlane.f32.xlu1 %v168_v47 }
  0x69   :  { %181 = vadd.xlane.f32.xlu0 %v161_v50  ;;  %197 = vadd.xlane.f32.xlu1 %v169_v51 }
  0x6d   :  { %183 = vadd.xlane.f32.xlu0 %v162_v54  ;;  %199 = vadd.xlane.f32.xlu1 %v170_v55 }
  0x71   :  { %185 = vadd.xlane.f32.xlu0 %v163_v58  ;;  %201 = vadd.xlane.f32.xlu1 %v171_v59 }
  0x75   :  { %187 = vadd.xlane.f32.xlu0 %v164_v62  ;;  %203 = vadd.xlane.f32.xlu1 %v172_v63 }
  0x79   :  { %1050 = vadd.xlane.f32.xlu1 %v2142_v34  ;;  %1048 = vadd.xlane.f32.xlu0 %v2147_v38 }
  0x7d   :  { %1054 = vadd.xlane.f32.xlu1 %v2152_v39 }
  0xc6   :  { %v270_v42 = vpop.xlane.xlu0 %269  ;;  %v274_v43 = vpop.xlane.xlu1 %273 }
  0xc7   :  { %v301_v46 = vmax.f32 %v270_v42, 1e-24  ;;  %v303_v47 = vmax.f32 %v274_v43, 1e-24 }
  0xc9   :  { %1590 = vrsqrt.f32 %v303_v47 }
  0xca   :  { %v272_v50 = vpop.xlane.xlu0 %271  ;;  %v276_v51 = vpop.xlane.xlu1 %275  ;;  %1592 = vrsqrt.f32 %v301_v46 }
  0xcb   :  { %v302_v54 = vmax.f32 %v272_v50, 1e-24  ;;  %v304_v55 = vmax.f32 %v276_v51, 1e-24 }
  0xcd   :  { %1594 = vrsqrt.f32 %v302_v54 }
  0xce   :  { %1596 = vrsqrt.f32 %v304_v55  ;;  %v280_v58 = vpop.xlane.xlu1 %279  ;;  %v278_v59 = vpop.xlane.xlu0 %277 }
  0xcf   :  { %v306_v62 = vmax.f32 %v280_v58, 1e-24  ;;  %v305_v63 = vmax.f32 %v278_v59, 1e-24 }
  0xd1   :  { %1598 = vrsqrt.f32 %v306_v62 }
  0xd2   :  { %1600 = vrsqrt.f32 %v305_v63  ;;  %v284_v3 = vpop.xlane.xlu1 %283  ;;  %v282_v4 = vpop.xlane.xlu0 %281 }
  0xd3   :  { %v1591_v6 = vpop.eup %1590  ;;  %v308_v7 = vmax.f32 %v284_v3, 1e-24  ;;  %v307_v11 = vmax.f32 %v282_v4, 1e-24 }
  0xd4   :  { %v1593_v10 = vpop.eup %1592  ;;  %v335_v27 = vmul.f32 %v1591_v6, %v1985_v1 }
  0xd5   :  { %v333_v35 = vmul.f32 %v1593_v10, %v1983_v0  ;;  %1602 = vrsqrt.f32 %v308_v7 }
  0xd6   :  { %v288_v14 = vpop.xlane.xlu1 %287  ;;  %v286_v18 = vpop.xlane.xlu0 %285  ;;  %1604 = vrsqrt.f32 %v307_v11 }
  0xd7   :  { %v1595_v22 = vpop.eup %1594  ;;  %v310_v58 = vmax.f32 %v288_v14, 1e-24  ;;  %v309_v1 = vmax.f32 %v286_v18, 1e-24 }
  0xd8   :  { %v1597_v31 = vpop.eup %1596  ;;  %v334_v42 = vmul.f32 %v1595_v22, %v1987_v2 }
  0xd9   :  { %v336_v43 = vmul.f32 %v1597_v31, %v1993_v5  ;;  %1606 = vrsqrt.f32 %v310_v58 }
  0xda   :  { %v1525_v46 = vpack.c.bf16 %v334_v42, %v333_v35  ;;  %v292_v47 = vpop.xlane.xlu1 %291  ;;  %v290_v50 = vpop.xlane.xlu0 %289  ;;  %1608 = vrsqrt.f32 %v309_v1 }
  0xdb   :  { %v1599_v51 = vpop.eup %1598  ;;  %v1529_v54 = vpack.c.bf16 %v336_v43, %v335_v27  ;;  %v312_v7 = vmax.f32 %v292_v47, 1e-24  ;;  %v311_v10 = vmax.f32 %v290_v50, 1e-24 }
  0xdc   :  { %v1601_v55 = vpop.eup %1600  ;;  %1526 = vmatprep.subr.bf16.mxu0 %v1525_v46  ;;  %1557 = vmatprep.subr.bf16.mxu1 %v1525_v46  ;;  %v338_v2 = vmul.f32 %v1599_v51, %v1999_v8 }
  0xdd   :  { %1528 = vmatpush3.bf16.xpose.msra.mxu0 %v1525_v46  ;;  %1565 = vmatpush3.bf16.xpose.msra.mxu1 %v1525_v46  ;;  %v337_v0 = vmul.f32 %v1601_v55, %v2001_v9  ;;  %1610 = vrsqrt.f32 %v312_v7 }
  0xde   :  { %1530 = vmatprep.subr.bf16.mxu0 %v1529_v54  ;;  %1558 = vmatprep.subr.bf16.mxu1 %v1529_v54  ;;  %v296_v5 = vpop.xlane.xlu1 %295  ;;  %v294_v59 = vpop.xlane.xlu0 %293  ;;  %1612 = vrsqrt.f32 %v311_v10 }
  0xdf   :  { %v1603_v62 = vpop.eup %1602  ;;  %v1533_v63 = vpack.c.bf16 %v338_v2, %v337_v0  ;;  %v314_v43 = vmax.f32 %v296_v5, 1e-24  ;;  %v313_v47 = vmax.f32 %v294_v59, 1e-24 }
  0xe0   :  { %v1605_v6 = vpop.eup %1604  ;;  %v340_v9 = vmul.f32 %v1603_v62, %v2007_v12 }
  0xe1   :  { %v339_v11 = vmul.f32 %v1605_v6, %v2009_v13 }
  0xe2   :  { %v300_v3 = vpop.xlane.xlu1 %299  ;;  %v298_v4 = vpop.xlane.xlu0 %297 }
  0xe3   :  { %v1607_v27 = vpop.eup %1606  ;;  %v1537_v31 = vpack.c.bf16 %v340_v9, %v339_v11  ;;  %v316_v2 = vmax.f32 %v300_v3, 1e-24  ;;  %v315_v59 = vmax.f32 %v298_v4, 1e-24 }
  0xe4   :  { %v1609_v35 = vpop.eup %1608  ;;  %v342_v13 = vmul.f32 %v1607_v27, %v2015_v16 }
  0xe5   :  { %1532 = vmatpush3.bf16.xpose.msra.mxu0 %v1529_v54  ;;  %1566 = vmatpush3.bf16.xpose.msra.mxu1 %v1529_v54  ;;  %v341_v12 = vmul.f32 %v1609_v35, %v2017_v17 }
  0xe6   :  { %1534 = vmatprep.subr.bf16.mxu0 %v1533_v63  ;;  %1559 = vmatprep.subr.bf16.mxu1 %v1533_v63  ;;  %v174_v8 = vpop.xlane.xlu0 %173  ;;  %v190_v14 = vpop.xlane.xlu1 %189 }
  0xe7   :  { %v205_v18 = vmax.f32 %v174_v8, 1e-24  ;;  %v213_v22 = vmax.f32 %v190_v14, 1e-24  ;;  %v1611_v50 = vpop.eup %1610  ;;  %v1541_v55 = vpack.c.bf16 %v342_v13, %v341_v12 }
  0xe8   :  { %v1613_v54 = vpop.eup %1612  ;;  %v344_v17 = vmul.f32 %v1611_v50, %v2023_v20 }
  0xe9   :  { %1614 = vrsqrt.f32 %v205_v18  ;;  %v343_v16 = vmul.f32 %v1613_v54, %v2025_v21 }
  0xea   :  { %1616 = vrsqrt.f32 %v213_v22  ;;  %v176_v42 = vpop.xlane.xlu0 %175  ;;  %v192_v46 = vpop.xlane.xlu1 %191 }
  0xeb   :  { %1618 = vrsqrt.f32 %v314_v43  ;;  %v1545_v7 = vpack.c.bf16 %v344_v17, %v343_v16  ;;  %v206_v18 = vmax.f32 %v176_v42, 1e-24  ;;  %v214_v22 = vmax.f32 %v192_v46, 1e-24 }
  0xec   :  { %1620 = vrsqrt.f32 %v313_v47 }
  0xed   :  { %1536 = vmatpush3.bf16.xpose.msra.mxu0 %v1533_v63  ;;  %1567 = vmatpush3.bf16.xpose.msra.mxu1 %v1533_v63  ;;  %1622 = vrsqrt.f32 %v316_v2 }
  0xee   :  { %1538 = vmatprep.subr.bf16.mxu0 %v1537_v31  ;;  %1560 = vmatprep.subr.bf16.mxu1 %v1537_v31  ;;  %v178_v51 = vpop.xlane.xlu0 %177  ;;  %v194_v58 = vpop.xlane.xlu1 %193  ;;  %1624 = vrsqrt.f32 %v315_v59 }
  0xef   :  { %v207_v35 = vmax.f32 %v178_v51, 1e-24  ;;  %1626 = vrsqrt.f32 %v206_v18  ;;  %v1907_v18 = vmov 0.0  }
  0xf0   :  { %1628 = vrsqrt.f32 %v214_v22  ;;  %94 = vst.msk [vmem:[#allocation4 + $0x8] sm:$0xff] %vm2941_vm9, %v1907_v18  ;;  %77 = vst.msk [vmem:[#allocation3] sm:$0xff] %vm2941_vm9, %v1907_v18  ;;  %v1908_v22 = vmov -inf  }
  0xf1   :  { %1630 = vrsqrt.f32 %v207_v35  ;;  %78 = vst.msk [vmem:[#allocation3 + $0x8] sm:$0xff] %vm2941_vm9, %v1907_v18  ;;  %79 = vst.msk [vmem:[#allocation3 + $0x10] sm:$0xff] %vm2941_vm9, %v1907_v18 }
  0xf2   :  { %v180_v63 = vpop.xlane.xlu0 %179  ;;  %v196_v6 = vpop.xlane.xlu1 %195  ;;  %80 = vst.msk [vmem:[#allocation3 + $0x18] sm:$0xff] %vm2941_vm9, %v1907_v18  ;;  %81 = vst.msk [vmem:[#allocation3 + $0x20] sm:$0xff] %vm2941_vm9, %v1907_v18 }
  0xf3   :  { %v1615_v1 = vpop.eup %1614  ;;  %v216_v12 = vmax.f32 %v196_v6, 1e-24  ;;  %82 = vst.msk [vmem:[#allocation3 + $0x28] sm:$0xff] %vm2941_vm9, %v1907_v18  ;;  %83 = vst.msk [vmem:[#allocation3 + $0x30] sm:$0xff] %vm2941_vm9, %v1907_v18 }
  0xf4   :  { %v1617_v0 = vpop.eup %1616  ;;  %v237_v5 = vmul.f32 %v1615_v1, %v2047_v32  ;;  %84 = vst.msk [vmem:[#allocation3 + $0x38] sm:$0xff] %vm2941_vm9, %v1907_v18  ;;  %85 = vst.msk [vmem:[#allocation3 + $0x40] sm:$0xff] %vm2941_vm9, %v1907_v18 }
  0xf5   :  { %1540 = vmatpush3.bf16.xpose.msra.mxu0 %v1537_v31  ;;  %1568 = vmatpush3.bf16.xpose.msra.mxu1 %v1537_v31  ;;  %v245_v62 = vmul.f32 %v1617_v0, %v2049_v33  ;;  %v1619_v3 = vpop.eup %1618  ;;  %86 = vst.msk [vmem:[#allocation3 + $0x48] sm:$0xff] %vm2941_vm9, %v1907_v18  ;;  %87 = vst.msk [vmem:[#allocation3 + $0x50] sm:$0xff] %vm2941_vm9, %v1907_v18 }
  0xf6   :  { %1542 = vmatprep.subr.bf16.mxu0 %v1541_v55  ;;  %1561 = vmatprep.subr.bf16.mxu1 %v1541_v55  ;;  %v1621_v32 = vpop.eup %1620  ;;  %v182_v4 = vpop.xlane.xlu0 %181  ;;  %v346_v21 = vmul.f32 %v1619_v3, %v2031_v24  ;;  %v208_v24 = vmax.f32 %v180_v63, 1e-24  ;;  %88 = vst.msk [vmem:[#allocation3 + $0x58] sm:$0xff] %vm2941_vm9, %v1907_v18  ;;  %89 = vst.msk [vmem:[#allocation3 + $0x60] sm:$0xff] %vm2941_vm9, %v1907_v18 }
  0xf7   :  { %1501 = vmatprep.mubr.f32.mxu0 %v237_v5  ;;  %1513 = vmatprep.mubr.f32.mxu1 %v245_v62  ;;  %v345_v33 = vmul.f32 %v1621_v32, %v2033_v25  ;;  %v198_v10 = vpop.xlane.xlu1 %197  ;;  %v1623_v20 = vpop.eup %1622  ;;  %v215_v25 = vmax.f32 %v194_v58, 1e-24  ;;  %v209_v50 = vmax.f32 %v182_v4, 1e-24  ;;  %90 = vst.msk [vmem:[#allocation3 + $0x68] sm:$0xff] %vm2941_vm9, %v1907_v18  ;;  %91 = vst.msk [vmem:[#allocation3 + $0x70] sm:$0xff] %vm2941_vm9, %v1907_v18 }
  0xf8   :  { %v1625_v9 = vpop.eup %1624  ;;  %v348_v31 = vmul.f32 %v1623_v20, %v2039_v28  ;;  %v217_v42 = vmax.f32 %v198_v10, 1e-24  ;;  %92 = vst.msk [vmem:[#allocation3 + $0x78] sm:$0xff] %vm2941_vm9, %v1907_v18  ;;  %93 = vst.msk [vmem:[#allocation4] sm:$0xff] %vm2941_vm9, %v1907_v18  ;;  %v1033_v35 = vld [vmem:[#allocation4 + $0x8] sm:$0xff] }
  0xf9   :  { %v1549_v11 = vpack.c.bf16 %v346_v21, %v345_v33  ;;  %v347_v27 = vmul.f32 %v1625_v9, %v2041_v29  ;;  %1632 = vrsqrt.f32 %v215_v25  ;;  %v1627_v1 = vpop.eup %1626  ;;  %95 = vst.msk [vmem:[#allocation4 + $0x10] sm:$0xff] %vm2941_vm9, %v1907_v18  ;;  %96 = vst.msk [vmem:[#allocation4 + $0x18] sm:$0xff] %vm2941_vm9, %v1907_v18 }
  0xfa   :  { %v184_v8 = vpop.xlane.xlu0 %183  ;;  %1634 = vrsqrt.f32 %v208_v24  ;;  %v1629_v2 = vpop.eup %1628  ;;  %v238_v17 = vmul.f32 %v1627_v1, %v2055_v36  ;;  %97 = vst.msk [vmem:[#allocation4 + $0x20] sm:$0xff] %vm2941_vm9, %v1907_v18  ;;  %98 = vst.msk [vmem:[#allocation4 + $0x28] sm:$0xff] %vm2941_vm9, %v1907_v18 }
  0xfb   :  { %v200_v14 = vpop.xlane.xlu1 %199  ;;  %v1553_v47 = vpack.c.bf16 %v348_v31, %v347_v27  ;;  %v210_v46 = vmax.f32 %v184_v8, 1e-24  ;;  %1636 = vrsqrt.f32 %v216_v12  ;;  %v1631_v5 = vpop.eup %1630  ;;  %v246_v63 = vmul.f32 %v1629_v2, %v2057_v37  ;;  %99 = vst.msk [vmem:[#allocation4 + $0x30] sm:$0xff] %vm2941_vm9, %v1907_v18  ;;  %100 = vst.msk [vmem:[#allocation4 + $0x38] sm:$0xff] %vm2941_vm9, %v1907_v18 }
  0xfc   :  { %v218_v28 = vmax.f32 %v200_v14, 1e-24  ;;  %1638 = vrsqrt.f32 %v209_v50  ;;  %v239_v3 = vmul.f32 %v1631_v5, %v2063_v40  ;;  %101 = vst.msk [vmem:[#allocation4 + $0x40] sm:$0xff] %vm2941_vm9, %v1907_v18  ;;  %102 = vst.msk [vmem:[#allocation4 + $0x48] sm:$0xff] %vm2941_vm9, %v1907_v18  ;;  %v520_v50 = vadd.s32 64, %v2111_v15 }
  0xfd   :  { %1544 = vmatpush3.bf16.xpose.msra.mxu0 %v1541_v55  ;;  %1569 = vmatpush3.bf16.xpose.msra.mxu1 %v1541_v55  ;;  %1640 = vrsqrt.f32 %v217_v42  ;;  %103 = vst.msk [vmem:[#allocation4 + $0x50] sm:$0xff] %vm2941_vm9, %v1907_v18  ;;  %104 = vst.msk [vmem:[#allocation4 + $0x58] sm:$0xff] %vm2941_vm9, %v1907_v18  ;;  %v523_v5 = vadd.s32 88, %v2111_v15 }
  0xfe   :  { %1546 = vmatprep.subr.bf16.mxu0 %v1545_v7  ;;  %1562 = vmatprep.subr.bf16.mxu1 %v1545_v7  ;;  %v186_v43 = vpop.xlane.xlu0 %185  ;;  %1642 = vrsqrt.f32 %v210_v46  ;;  %105 = vst.msk [vmem:[#allocation4 + $0x60] sm:$0xff] %vm2941_vm9, %v1907_v18  ;;  %106 = vst.msk [vmem:[#allocation4 + $0x68] sm:$0xff] %vm2941_vm9, %v1907_v18  ;;  %vm558_vm11 = vcmp.ne.s32.totalorder %v520_v50, %v2114_v19 }
  0xff   :  { %v202_v13 = vpop.xlane.xlu1 %201  ;;  %v211_v29 = vmax.f32 %v186_v43, 1e-24  ;;  %1644 = vrsqrt.f32 %v218_v28  ;;  %107 = vst.msk [vmem:[#allocation4 + $0x70] sm:$0xff] %vm2941_vm9, %v1907_v18  ;;  %108 = vst.msk [vmem:[#allocation4 + $0x78] sm:$0xff] %vm2941_vm9, %v1907_v18  ;;  %v1032_v25 = vld [vmem:[#allocation4] sm:$0xff]  ;;  %vm561_vm14 = vcmp.ne.s32.totalorder %v523_v5, %v2114_v19 }
 0x100   :  { %v219_v54 = vmax.f32 %v202_v13, 1e-24  ;;  %109 = vst.msk [vmem:[#allocation5] sm:$0xff] %vm2941_vm9, %v1907_v18  ;;  %110 = vst.msk [vmem:[#allocation5 + $0x8] sm:$0xff] %vm2941_vm9, %v1907_v18  ;;  %v1035_v24 = vld [vmem:[#allocation4 + $0x18] sm:$0xff]  ;;  %v521_v13 = vadd.s32 72, %v2111_v15 }
 0x101   :  { %1646 = vrsqrt.f32 %v211_v29  ;;  %111 = vst.msk [vmem:[#allocation5 + $0x10] sm:$0xff] %vm2941_vm9, %v1907_v18  ;;  %112 = vst.msk [vmem:[#allocation5 + $0x18] sm:$0xff] %vm2941_vm9, %v1907_v18 }
 0x102   :  { %v188_v51 = vpop.xlane.xlu0 %187  ;;  %1648 = vrsqrt.f32 %v219_v54  ;;  %113 = vst.msk [vmem:[#allocation5 + $0x20] sm:$0xff] %vm2941_vm9, %v1907_v18  ;;  %114 = vst.msk [vmem:[#allocation5 + $0x28] sm:$0xff] %vm2941_vm9, %v1907_v18  ;;  %vm559_vm10 = vcmp.ne.s32.totalorder %v521_v13, %v2114_v19 }
 0x103   :  { %v204_v55 = vpop.xlane.xlu1 %203  ;;  %v212_v58 = vmax.f32 %v188_v51, 1e-24  ;;  %v1633_v59 = vpop.eup %1632  ;;  %115 = vst.msk [vmem:[#allocation5 + $0x30] sm:$0xff] %vm2941_vm9, %v1907_v18  ;;  %116 = vst.msk [vmem:[#allocation5 + $0x38] sm:$0xff] %vm2941_vm9, %v1907_v18 }
 0x104   :  { %v220_v0 = vmax.f32 %v204_v55, 1e-24  ;;  %v1635_v62 = vpop.eup %1634  ;;  %117 = vst.msk [vmem:[#allocation5 + $0x40] sm:$0xff] %vm2941_vm9, %v1907_v18  ;;  %118 = vst.msk [vmem:[#allocation5 + $0x48] sm:$0xff] %vm2941_vm9, %v1907_v18 }
 0x105   :  { %1548 = vmatpush3.bf16.xpose.msra.mxu0 %v1545_v7  ;;  %1570 = vmatpush3.bf16.xpose.msra.mxu1 %v1545_v7  ;;  %1650 = vrsqrt.f32 %v212_v58  ;;  %v1637_v16 = vpop.eup %1636  ;;  %v247_v7 = vmul.f32 %v1633_v59, %v2065_v41  ;;  %v240_v21 = vmul.f32 %v1635_v62, %v2071_v44  ;;  %119 = vst.msk [vmem:[#allocation5 + $0x50] sm:$0xff] %vm2941_vm9, %v1907_v18  ;;  %120 = vst.msk [vmem:[#allocation5 + $0x58] sm:$0xff] %vm2941_vm9, %v1907_v18 }
 0x106   :  { %1550 = vmatprep.subr.bf16.mxu0 %v1549_v11  ;;  %1563 = vmatprep.subr.bf16.mxu1 %v1549_v11  ;;  %1652 = vrsqrt.f32 %v220_v0  ;;  %v1639_v6 = vpop.eup %1638  ;;  %v248_v10 = vmul.f32 %v1637_v16, %v2073_v45  ;;  %121 = vst.msk [vmem:[#allocation5 + $0x60] sm:$0xff] %vm2941_vm9, %v1907_v18  ;;  %122 = vst.msk [vmem:[#allocation5 + $0x68] sm:$0xff] %vm2941_vm9, %v1907_v18  ;;  %v1049_v27 = vpop.xlane.xlu0 %1048 }
 0x107   :  { %v1641_v32 = vpop.eup %1640  ;;  %v241_v36 = vmul.f32 %v1639_v6, %v2079_v48  ;;  %123 = vst.msk [vmem:[#allocation5 + $0x70] sm:$0xff] %vm2941_vm9, %v1907_v18  ;;  %124 = vst.msk [vmem:[#allocation5 + $0x78] sm:$0xff] %vm2941_vm9, %v1907_v18 }
 0x108   :  { %v1643_v4 = vpop.eup %1642  ;;  %v249_v37 = vmul.f32 %v1641_v32, %v2081_v49  ;;  %62 = vst.msk [vmem:[#allocation2 + $0x8] sm:$0xff] %vm2941_vm9, %v1908_v22  ;;  %61 = vst.msk [vmem:[#allocation2] sm:$0xff] %vm2941_vm9, %v1908_v22 }
 0x109   :  { %v1645_v33 = vpop.eup %1644  ;;  %v242_v41 = vmul.f32 %v1643_v4, %v2087_v52  ;;  %v970_v52 = vld [vmem:[#allocation11 + $0x10] sm:$0xff]  ;;  %63 = vst.msk [vmem:[#allocation2 + $0x10] sm:$0xff] %vm2941_vm9, %v1908_v22  ;;  %64 = vst.msk [vmem:[#allocation2 + $0x18] sm:$0xff] %vm2941_vm9, %v1908_v22 }
 0x10a   :  { %v250_v9 = vmul.f32 %v1645_v33, %v2089_v53  ;;  %v988_v14 = vmul.f32 1.442695, %v970_v52  ;;  %v514_v53 = vadd.s32 16, %v2111_v15  ;;  %65 = vst.msk [vmem:[#allocation2 + $0x20] sm:$0xff] %vm2941_vm9, %v1908_v22  ;;  %66 = vst.msk [vmem:[#allocation2 + $0x28] sm:$0xff] %vm2941_vm9, %v1908_v22  ;;  %v517_v33 = vadd.s32 40, %v2111_v15 }
 0x10b   :  { %v1647_v20 = vpop.eup %1646  ;;  %67 = vst.msk [vmem:[#allocation2 + $0x30] sm:$0xff] %vm2941_vm9, %v1908_v22  ;;  %68 = vst.msk [vmem:[#allocation2 + $0x38] sm:$0xff] %vm2941_vm9, %v1908_v22  ;;  %v524_v52 = vadd.s32 96, %v2111_v15 }
 0x10c   :  { %v243_v44 = vmul.f32 %v1647_v20, %v2095_v56  ;;  %1654 = vpow2.f32 %v988_v14  ;;  %vm552_vm7 = vcmp.ne.s32.totalorder %v514_v53, %v2114_v19  ;;  %69 = vst.msk [vmem:[#allocation2 + $0x40] sm:$0xff] %vm2941_vm9, %v1908_v22  ;;  %70 = vst.msk [vmem:[#allocation2 + $0x48] sm:$0xff] %vm2941_vm9, %v1908_v22  ;;  %v516_v20 = vadd.s32 32, %v2111_v15  ;;  %v1034_v14 = vld [vmem:[#allocation4 + $0x10] sm:$0xff] }
 0x10d   :  { %1552 = vmatpush3.bf16.xpose.msra.mxu0 %v1549_v11  ;;  %1571 = vmatpush3.bf16.xpose.msra.mxu1 %v1549_v11  ;;  %v1649_v11 = vpop.eup %1648  ;;  %vm2191_vm8 = vmand %vm552_vm7, %vm566_vm1  ;;  %71 = vst.msk [vmem:[#allocation2 + $0x50] sm:$0xff] %vm2941_vm9, %v1908_v22  ;;  %vm555_vm3 = vcmp.ne.s32.totalorder %v517_v33, %v2114_v19 }
 0x10e   :  { %1554 = vmatprep.subr.bf16.mxu0 %v1553_v47  ;;  %1564 = vmatprep.subr.bf16.mxu1 %v1553_v47  ;;  %v251_v45 = vmul.f32 %v1649_v11, %v2097_v57  ;;  %v2974_v57 = vmov 0  ;;  %72 = vst.msk [vmem:[#allocation2 + $0x58] sm:$0xff] %vm2941_vm9, %v1908_v22  ;;  %73 = vst.msk [vmem:[#allocation2 + $0x60] sm:$0xff] %vm2941_vm9, %v1908_v22  ;;  %vm554_vm7 = vcmp.ne.s32.totalorder %v516_v20, %v2114_v19 }
 0x10f   :  { %v1651_v40 = vpop.eup %1650  ;;  %v2975_v57 = vsel %vm2191_vm8, 4294967295, %v2974_v57  ;;  %74 = vst.msk [vmem:[#allocation2 + $0x68] sm:$0xff] %vm2941_vm9, %v1908_v22  ;;  %75 = vst.msk [vmem:[#allocation2 + $0x70] sm:$0xff] %vm2941_vm9, %v1908_v22 }
 0x110   :  { %v1653_v8 = vpop.eup %1652  ;;  %v244_v48 = vmul.f32 %v1651_v40, %v2103_v60  ;;  %76 = vst.msk [vmem:[#allocation2 + $0x78] sm:$0xff] %vm2941_vm9, %v1908_v22  ;;  %vm2284_vm12 = vmand %vm559_vm10, %vm566_vm1 }
 0x111   :  { %v252_v49 = vmul.f32 %v1653_v8, %v2105_v61  ;;  %v2200_v61 = vpop.xlane.xlu1 %1050  ;;  %vm2293_vm13 = vmand %vm558_vm11, %vm566_vm1 }
 0x112   :  { %v1081_v43 = vadd.f32 %v2200_v61, %v1033_v35  ;;  %vm2328_vm0 = vmand %vm561_vm14, %vm566_vm1 }
 0x113   :  { %vm2352_vm10 = vmand %vm555_vm3, %vm566_vm1 }
 0x114   :  { %1097 = vst.msk [vmem:[#allocation4 + $0x8] sm:$0xff] %vm2941_vm9, %v1081_v43  ;;  %vm2361_vm14 = vmand %vm554_vm7, %vm566_vm1 }
 0x115   :  { %1556 = vmatpush3.bf16.xpose.msra.mxu0 %v1553_v47  ;;  %1572 = vmatpush3.bf16.xpose.msra.mxu1 %v1553_v47  ;;  %v1055_v31 = vpop.xlane.xlu1 %1054  ;;  %v1080_v47 = vadd.f32 %v1049_v27, %v1032_v25 }
 0x116   :  { %v1655_v56 = vpop.eup %1654  ;;  %v1083_v12 = vadd.f32 %v1055_v31, %v1035_v24  ;;  %v519_v24 = vadd.s32 56, %v2111_v15 }
 0x117   :  { %v2197_v60 = vsel %vm2191_vm8, %v1655_v56, 0.0  ;;  %1096 = vst.msk [vmem:[#allocation4] sm:$0xff] %vm2941_vm9, %v1080_v47  ;;  %v518_v47 = vadd.s32 48, %v2111_v15 }
 0x118   :  { %1052 = vadd.xlane.f32.xlu0 %v2197_v60  ;;  %1099 = vst.msk [vmem:[#allocation4 + $0x18] sm:$0xff] %vm2941_vm9, %v1083_v12  ;;  %v972_v12 = vld [vmem:[#allocation11 + $0x20] sm:$0xff]  ;;  %vm557_vm7 = vcmp.ne.s32.totalorder %v519_v24, %v2114_v19 }
 0x119   :  { %v992_v5 = vmul.f32 1.442695, %v972_v12 }
 0x11b   :  { %1656 = vpow2.f32 %v992_v5 }
 0x11c   :  { %1502 = vmatmul.mubr.f32.vlgmr.msra.gmra.mrb[0].mxu0 %v238_v17  ;;  %1514 = vmatmul.mubr.f32.vlgmr.msra.gmra.mrb[0].mxu1 %v246_v63  ;;  %v522_v17 = vadd.s32 80, %v2111_v15 }
 0x11d   :  { %1504 = vmatprep.mubr.f32.mxu0 %v239_v3  ;;  %1516 = vmatprep.mubr.f32.mxu1 %v247_v7 }
 0x11e   :  { %vm560_vm15 = vcmp.ne.s32.totalorder %v522_v17, %v2114_v19 }
 0x11f   :  { %vm2334_vm2 = vmand %vm560_vm15, %vm566_vm1  ;;  %vm562_vm15 = vcmp.ne.s32.totalorder %v524_v52, %v2114_v19 }
 0x120   :  { %1505 = vmatmul.mubr.f32.gmra.mrb[2].mxu0 %v240_v21  ;;  %1517 = vmatmul.mubr.f32.gmra.mrb[2].mxu1 %v248_v10 }
 0x121   :  { %1507 = vmatprep.mubr.f32.mxu0 %v241_v36  ;;  %1519 = vmatprep.mubr.f32.mxu1 %v249_v37 }
 0x124   :  { %1508 = vmatmul.mubr.f32.gmra.mrb[4].mxu0 %v242_v41  ;;  %1520 = vmatmul.mubr.f32.gmra.mrb[4].mxu1 %v250_v9 }
 0x125   :  { %1510 = vmatprep.mubr.f32.mxu0 %v243_v44  ;;  %1522 = vmatprep.mubr.f32.mxu1 %v251_v45  ;;  %v525_v45 = vadd.s32 104, %v2111_v15 }
 0x127   :  { %vm563_vm11 = vcmp.ne.s32.totalorder %v525_v45, %v2114_v19  ;;  %v2452_v45 = vld [vmem:[#allocation2 + $0x8] sm:$0xff] }
 0x128   :  { %1511 = vmatmul.mubr.f32.gmra.mrb[6].mxu0 %v244_v48  ;;  %1523 = vmatmul.mubr.f32.gmra.mrb[6].mxu1 %v252_v49  ;;  %vm2376_vm3 = vmand %vm563_vm11, %vm566_vm1  ;;  %vm556_vm11 = vcmp.ne.s32.totalorder %v518_v47, %v2114_v19 }
 0x1a5   :  { %v1053_v35 = vpop.xlane.xlu0 %1052 }
 0x1a6   :  { %v1082_v43 = vadd.f32 %v1053_v35, %v1034_v14 }
 0x1a8   :  { %1098 = vst.msk [vmem:[#allocation4 + $0x10] sm:$0xff] %vm2941_vm9, %v1082_v43 }
 0x1ef   :  { %v1503_v42 = vpop.f32.mrb[0].mxu0  ;;  %v1515_v46 = vpop.f32.mrb[0].mxu1 }
 0x1f0   :  { %v2274_v28 = vmul.f32 10.0, %v1503_v42  ;;  %v415_v29 = vpop.f32.mrb[1].mxu0  ;;  %v2276_v51 = vmul.f32 10.0, %v1515_v46  ;;  %v455_v54 = vpop.f32.mrb[1].mxu1 }
 0x1f1   :  { %v2278_v55 = vmul.f32 10.0, %v415_v29  ;;  %v2280_v58 = vmul.f32 10.0, %v455_v54 }
 0x1f2   :  { %v584_v0 = vsel %vm2124_vm4, %v2274_v28, -1e+30  ;;  %v592_v63 = vsel %vm2284_vm12, %v2276_v51, -1e+30 }
 0x1f3   :  { %601 = vmax.xlane.f32.xlu1 %v584_v0  ;;  %v583_v59 = vsel %vm2130_vm5, %v2278_v55, -1e+30  ;;  %v1506_v62 = vpop.f32.mrb[2].mxu0  ;;  %v1518_v16 = vpop.f32.mrb[2].mxu1  ;;  %v591_v32 = vsel %vm2293_vm13, %v2280_v58, -1e+30 }
 0x1f4   :  { %599 = vmax.xlane.f32.xlu0 %v583_v59  ;;  %v2305_v6 = vmul.f32 10.0, %v1506_v62  ;;  %v425_v3 = vpop.f32.mrb[3].mxu0  ;;  %v465_v7 = vpop.f32.mrb[3].mxu1  ;;  %v2316_v36 = vmul.f32 10.0, %v1518_v16  ;;  %v527_v0 = vadd.s32 120, %v2111_v15  ;;  %v1909_v59 = vmov 0  }
 0x1f5   :  { %v2310_v4 = vmul.f32 10.0, %v425_v3  ;;  %v2324_v9 = vmul.f32 10.0, %v465_v7  ;;  %1582 = vset.pattern.permute.xlu1 %v1909_v59  ;;  %1583 = vset.pattern.permute.xlu0 %v1909_v59  ;;  %v526_v62 = vadd.s32 112, %v2111_v15 }
 0x1f6   :  { %v586_v37 = vsel %vm2136_vm6, %v2305_v6, -1e+30  ;;  %v594_v53 = vsel %vm2328_vm0, %v2316_v36, -1e+30  ;;  %vm565_vm9 = vcmp.ne.s32.totalorder %v527_v0, %v2114_v19  ;;  %vm2414_vm6 = vmand %vm556_vm11, %vm566_vm1  ;;  %v2488_v0 = vld [vmem:[#allocation2 + $0x10] sm:$0xff] }
 0x1f7   :  { %617 = vmax.xlane.f32.xlu1 %v592_v63  ;;  %v1509_v21 = vpop.f32.mrb[4].mxu0  ;;  %v1521_v10 = vpop.f32.mrb[4].mxu1  ;;  %v585_v41 = vsel %vm2191_vm8, %v2310_v4, -1e+30  ;;  %v593_v22 = vsel %vm2334_vm2, %v2324_v9, -1e+30  ;;  %vm2388_vm8 = vmand %vm562_vm15, %vm566_vm1 }
 0x1f8   :  { %615 = vmax.xlane.f32.xlu0 %v591_v32  ;;  %v435_v11 = vpop.f32.mrb[5].mxu0  ;;  %v475_v40 = vpop.f32.mrb[5].mxu1  ;;  %v2345_v56 = vmul.f32 10.0, %v1509_v21  ;;  %v2368_v13 = vmul.f32 10.0, %v1521_v10  ;;  %vm2402_vm15 = vmand %vm557_vm7, %vm566_vm1  ;;  %vm564_vm7 = vcmp.ne.s32.totalorder %v526_v62, %v2114_v19  ;;  %3004 = vst [vmem:[#allocation17_spill] sm:$0xff] %v2488_v0 }
 0x1f9   :  { %v2356_v31 = vmul.f32 10.0, %v435_v11  ;;  %v2383_v29 = vmul.f32 10.0, %v475_v40  ;;  %vm2426_vm5 = vmand %vm565_vm9, %vm566_vm1 }
 0x1fa   :  { %v588_v50 = vsel %vm2352_vm10, %v2345_v56, -1e+30  ;;  %v596_v16 = vsel %vm2376_vm3, %v2368_v13, -1e+30  ;;  %vm2437_vm11 = vmand %vm564_vm7, %vm566_vm1  ;;  %vm3000_vm1 = vcmask 7168  }
 0x1fb   :  { %605 = vmax.xlane.f32.xlu1 %v586_v37  ;;  %v1512_v48 = vpop.f32.mrb[6].mxu0  ;;  %v1524_v49 = vpop.f32.mrb[6].mxu1  ;;  %v587_v46 = vsel %vm2361_vm14, %v2356_v31, -1e+30  ;;  %v595_v3 = vsel %vm2388_vm8, %v2383_v29, -1e+30  ;;  %vm3001_vm9 = vmmov %vm3000_vm1 }
 0x1fc   :  { %603 = vmax.xlane.f32.xlu0 %v585_v41  ;;  %v445_v61 = vpop.f32.mrb[7].mxu0  ;;  %v485_v18 = vpop.f32.mrb[7].mxu1  ;;  %v2398_v17 = vmul.f32 10.0, %v1512_v48  ;;  %v2419_v32 = vmul.f32 10.0, %v1524_v49  ;;  %v2454_v48 = vld [vmem:[#allocation2] sm:$0xff]  ;;  %vm3003_vm7 = vmmov %vm3000_vm1 }
 0x1fd   :  { %v2409_v7 = vmul.f32 10.0, %v445_v61  ;;  %v2433_v20 = vmul.f32 10.0, %v485_v18  ;;  %v1657_v41 = vpop.eup %1656  ;;  %v2462_v61 = vld [vmem:[#allocation2 + $0x48] sm:$0xff] }
 0x1fe   :  { %v590_v33 = vsel %vm2402_vm15, %v2398_v17, -1e+30  ;;  %v598_v11 = vsel %vm2426_vm5, %v2419_v32, -1e+30  ;;  %v2449_v19 = vsel %vm2361_vm14, %v1657_v41, 0.0 }
 0x1ff   :  { %621 = vmax.xlane.f32.xlu1 %v594_v53  ;;  %v589_v10 = vsel %vm2414_vm6, %v2409_v7, -1e+30  ;;  %v597_v40 = vsel %vm2437_vm11, %v2433_v20, -1e+30 }
 0x200   :  { %619 = vmax.xlane.f32.xlu0 %v593_v22  ;;  %v2469_v22 = vld [vmem:[#allocation2 + $0x40] sm:$0xff] }
 0x203   :  { %609 = vmax.xlane.f32.xlu1 %v588_v50  ;;  %v2481_v50 = vld [vmem:[#allocation2 + $0x18] sm:$0xff] }
 0x204   :  { %607 = vmax.xlane.f32.xlu0 %v587_v46  ;;  %3002 = vst [vmem:[#allocation16_spill] sm:$0xff] %v2481_v50 }
 0x207   :  { %625 = vmax.xlane.f32.xlu1 %v596_v16 }
 0x208   :  { %623 = vmax.xlane.f32.xlu0 %v595_v3 }
 0x20b   :  { %613 = vmax.xlane.f32.xlu1 %v590_v33  ;;  %v2501_v33 = vld [vmem:[#allocation2 + $0x58] sm:$0xff] }
 0x20c   :  { %611 = vmax.xlane.f32.xlu0 %v589_v10  ;;  %3007 = vst [vmem:[#allocation20_spill] sm:$0xff] %v2501_v33  ;;  %v2538_v10 = vld [vmem:[#allocation2 + $0x68] sm:$0xff] }
 0x20d   :  { %3017 = vst [vmem:[#allocation27_spill] sm:$0xff] %v2538_v10 }
 0x20f   :  { %629 = vmax.xlane.f32.xlu1 %v598_v11  ;;  %v2508_v11 = vld [vmem:[#allocation2 + $0x50] sm:$0xff] }
 0x210   :  { %627 = vmax.xlane.f32.xlu0 %v597_v40  ;;  %3009 = vst [vmem:[#allocation21_spill] sm:$0xff] %v2508_v11 }
 0x214   :  { %1056 = vadd.xlane.f32.xlu0 %v2449_v19 }
 0x280   :  { %v602_v49 = vpop.xlane.xlu1 %601 }
 0x281   :  { %v2457_v52 = vmax.f32 %v2452_v45, %v602_v49  ;;  %v600_v14 = vpop.xlane.xlu0 %599 }
 0x282   :  { %v2460_v53 = vmax.f32 %v2454_v48, %v600_v14 }
 0x283   :  { %953 = vst.msk [vmem:[#allocation2 + $0x8] sm:$0xff] %vm3000_vm1, %v2457_v52  ;;  %718 = vperm.xlu1 %1582, %v2457_v52  }
 0x284   :  { %952 = vst.msk [vmem:[#allocation2] sm:$0xff] %vm3001_vm9, %v2460_v53  ;;  %v618_v24 = vpop.xlane.xlu1 %617  ;;  %vm3008_vm9 = vmmov %vm3000_vm1 }
 0x285   :  { %v2476_v43 = vmax.f32 %v2462_v61, %v618_v24  ;;  %v616_v47 = vpop.xlane.xlu0 %615  ;;  %v2518_v24 = vld [vmem:[#allocation2 + $0x28] sm:$0xff] }
 0x286   :  { %v2479_v12 = vmax.f32 %v2469_v22, %v616_v47  ;;  %3012 = vst [vmem:[#allocation23_spill] sm:$0xff] %v2518_v24 }
 0x287   :  { %961 = vst.msk [vmem:[#allocation2 + $0x48] sm:$0xff] %vm3003_vm7, %v2476_v43  ;;  %758 = vperm.xlu0 %1583, %v2476_v43   ;;  %vm3010_vm7 = vmmov %vm3000_vm1 }
 0x288   :  { %960 = vst.msk [vmem:[#allocation2 + $0x40] sm:$0xff] %vm3000_vm1, %v2479_v12  ;;  %v606_v59 = vpop.xlane.xlu1 %605  ;;  %753 = vperm.xlu1 %1582, %v2479_v12  }
 0x289   :  { %v2496_v62 = vmax.f32 %v2481_v50, %v606_v59  ;;  %v604_v16 = vpop.xlane.xlu0 %603 }
 0x28a   :  { %v2499_v3 = vmax.f32 %v2488_v0, %v604_v16  ;;  %v2528_v16 = vld [vmem:[#allocation2 + $0x20] sm:$0xff] }
 0x28b   :  { %3005 = vst [vmem:[#allocation18_spill] sm:$0xff] %v2496_v62  ;;  %955 = vst.msk [vmem:[#allocation2 + $0x18] sm:$0xff] %vm3008_vm9, %v2496_v62  ;;  %713 = vperm.xlu0 %1583, %v2460_v53  }
 0x28c   :  { %3006 = vst [vmem:[#allocation19_spill] sm:$0xff] %v2499_v3  ;;  %954 = vst.msk [vmem:[#allocation2 + $0x10] sm:$0xff] %vm3010_vm7, %v2499_v3  ;;  %v622_v41 = vpop.xlane.xlu1 %621  ;;  %728 = vperm.xlu1 %1582, %v2496_v62  }
 0x28d   :  { %v2516_v49 = vmax.f32 %v2501_v33, %v622_v41  ;;  %v620_v14 = vpop.xlane.xlu0 %619  ;;  %3014 = vst [vmem:[#allocation25_spill] sm:$0xff] %v2528_v16  ;;  %vm3015_vm9 = vmmov %vm3000_vm1  ;;  %v2547_v41 = vld [vmem:[#allocation2 + $0x60] sm:$0xff] }
 0x28e   :  { %v2521_v47 = vmax.f32 %v2508_v11, %v620_v14  ;;  %vm3019_vm7 = vmmov %vm3000_vm1  ;;  %3020 = vst [vmem:[#allocation29_spill] sm:$0xff] %v2547_v41  ;;  %v2557_v11 = vld [vmem:[#allocation2 + $0x38] sm:$0xff] }
 0x28f   :  { %3011 = vst [vmem:[#allocation22_spill] sm:$0xff] %v2516_v49  ;;  %963 = vst.msk [vmem:[#allocation2 + $0x58] sm:$0xff] %vm3000_vm1, %v2516_v49  ;;  %768 = vperm.xlu0 %1583, %v2516_v49  }
 0x290   :  { %3013 = vst [vmem:[#allocation24_spill] sm:$0xff] %v2521_v47  ;;  %v610_v40 = vpop.xlane.xlu1 %609  ;;  %962 = vst.msk [vmem:[#allocation2 + $0x50] sm:$0xff] %vm3015_vm9, %v2521_v47  ;;  %723 = vperm.xlu1 %1582, %v2499_v3  }
 0x291   :  { %v2536_v14 = vmax.f32 %v2518_v24, %v610_v40  ;;  %v608_v59 = vpop.xlane.xlu0 %607  ;;  %3022 = vst [vmem:[#allocation31_spill] sm:$0xff] %v2557_v11  ;;  %vm3024_vm9 = vmmov %vm3000_vm1  ;;  %v2567_v40 = vld [vmem:[#allocation2 + $0x30] sm:$0xff] }
 0x292   :  { %v2541_v35 = vmax.f32 %v2528_v16, %v608_v59  ;;  %3025 = vst [vmem:[#allocation33_spill] sm:$0xff] %v2567_v40 }
 0x293   :  { %3016 = vst [vmem:[#allocation26_spill] sm:$0xff] %v2536_v14  ;;  %957 = vst.msk [vmem:[#allocation2 + $0x28] sm:$0xff] %vm3019_vm7, %v2536_v14 }
 0x294   :  { %3018 = vst [vmem:[#allocation28_spill] sm:$0xff] %v2541_v35  ;;  %v626_v46 = vpop.xlane.xlu1 %625  ;;  %763 = vperm.xlu1 %1582, %v2521_v47   ;;  %956 = vst.msk [vmem:[#allocation2 + $0x20] sm:$0xff] %vm3000_vm1, %v2541_v35 }
 0x295   :  { %v2555_v59 = vmax.f32 %v2538_v10, %v626_v46  ;;  %v624_v18 = vpop.xlane.xlu0 %623  ;;  %vm3026_vm7 = vmmov %vm3000_vm1  ;;  %v2577_v10 = vld [vmem:[#allocation2 + $0x78] sm:$0xff] }
 0x296   :  { %v2560_v5 = vmax.f32 %v2547_v41, %v624_v18  ;;  %3028 = vst [vmem:[#allocation35_spill] sm:$0xff] %v2577_v10 }
 0x297   :  { %3021 = vst [vmem:[#allocation30_spill] sm:$0xff] %v2555_v59  ;;  %965 = vst.msk [vmem:[#allocation2 + $0x68] sm:$0xff] %vm3024_vm9, %v2555_v59  ;;  %778 = vperm.xlu0 %1583, %v2555_v59  }
 0x298   :  { %3023 = vst [vmem:[#allocation32_spill] sm:$0xff] %v2560_v5  ;;  %v614_v16 = vpop.xlane.xlu1 %613  ;;  %738 = vperm.xlu1 %1582, %v2536_v14   ;;  %964 = vst.msk [vmem:[#allocation2 + $0x60] sm:$0xff] %vm3026_vm7, %v2560_v5  ;;  %v2586_v14 = vld [vmem:[#allocation2 + $0x70] sm:$0xff] }
 0x299   :  { %v2575_v18 = vmax.f32 %v2557_v11, %v614_v16  ;;  %v612_v24 = vpop.xlane.xlu0 %611  ;;  %3030 = vst [vmem:[#allocation37_spill] sm:$0xff] %v2586_v14  ;;  %vm3031_vm9 = vmmov %vm3000_vm1  ;;  %v974_v11 = vld [vmem:[#allocation11 + $0x30] sm:$0xff] }
 0x29a   :  { %v2580_v47 = vmax.f32 %v2567_v40, %v612_v24  ;;  %vm3034_vm7 = vmmov %vm3000_vm1 }
 0x29b   :  { %3027 = vst [vmem:[#allocation34_spill] sm:$0xff] %v2575_v18  ;;  %959 = vst.msk [vmem:[#allocation2 + $0x38] sm:$0xff] %vm3000_vm1, %v2575_v18 }
 0x29c   :  { %3029 = vst [vmem:[#allocation36_spill] sm:$0xff] %v2580_v47  ;;  %v630_v46 = vpop.xlane.xlu1 %629  ;;  %733 = vperm.xlu1 %1582, %v2541_v35   ;;  %958 = vst.msk [vmem:[#allocation2 + $0x30] sm:$0xff] %vm3031_vm9, %v2580_v47  ;;  %v1036_v35 = vld [vmem:[#allocation4 + $0x20] sm:$0xff] }
 0x29d   :  { %v2594_v24 = vmax.f32 %v2577_v10, %v630_v46  ;;  %v628_v41 = vpop.xlane.xlu0 %627  ;;  %vm3035_vm9 = vmmov %vm3000_vm1  ;;  %v976_v10 = vld [vmem:[#allocation11 + $0x40] sm:$0xff] }
 0x29e   :  { %v2597_v59 = vmax.f32 %v2586_v14, %v628_v41  ;;  %v1000_v40 = vmul.f32 1.442695, %v976_v10  ;;  %v980_v14 = vld [vmem:[#allocation11 + $0x60] sm:$0xff]  ;;  %v975_v10 = vld [vmem:[#allocation11 + $0x38] sm:$0xff] }
 0x29f   :  { %3032 = vst [vmem:[#allocation38_spill] sm:$0xff] %v2594_v24  ;;  %967 = vst.msk [vmem:[#allocation2 + $0x78] sm:$0xff] %vm3034_vm7, %v2594_v24  ;;  %788 = vperm.xlu0 %1583, %v2594_v24   ;;  %v996_v24 = vmul.f32 1.442695, %v974_v11  ;;  %v1008_v49 = vmul.f32 1.442695, %v980_v14 }
 0x2a0   :  { %3033 = vst [vmem:[#allocation39_spill] sm:$0xff] %v2597_v59  ;;  %773 = vperm.xlu1 %1582, %v2560_v5   ;;  %966 = vst.msk [vmem:[#allocation2 + $0x70] sm:$0xff] %vm3000_vm1, %v2597_v59  ;;  %v978_v5 = vld [vmem:[#allocation11 + $0x50] sm:$0xff] }
 0x2a1   :  { %v1057_v46 = vpop.xlane.xlu0 %1056  ;;  %1658 = vpow2.f32 %v996_v24  ;;  %v1004_v16 = vmul.f32 1.442695, %v978_v5 }
 0x2a2   :  { %v1084_v41 = vadd.f32 %v1057_v46, %v1036_v35  ;;  %1660 = vpow2.f32 %v1000_v40  ;;  %v982_v35 = vld [vmem:[#allocation11 + $0x70] sm:$0xff]  ;;  %v977_v40 = vld [vmem:[#allocation11 + $0x48] sm:$0xff] }
 0x2a3   :  { %1662 = vpow2.f32 %v1004_v16 }
 0x2a4   :  { %748 = vperm.xlu1 %1582, %v2575_v18   ;;  %1100 = vst.msk [vmem:[#allocation4 + $0x20] sm:$0xff] %vm3035_vm9, %v1084_v41  ;;  %v973_v18 = vld [vmem:[#allocation11 + $0x28] sm:$0xff]  ;;  %1664 = vpow2.f32 %v1008_v49  ;;  %v1012_v41 = vmul.f32 1.442695, %v982_v35  ;;  %v998_v49 = vmul.f32 1.442695, %v975_v10 }
 0x2a5   :  { %v994_v11 = vmul.f32 1.442695, %v973_v18  ;;  %v1002_v18 = vmul.f32 1.442695, %v977_v40  ;;  %v979_v35 = vld [vmem:[#allocation11 + $0x58] sm:$0xff] }
 0x2a6   :  { %1666 = vpow2.f32 %v1012_v41  ;;  %v1006_v41 = vmul.f32 1.442695, %v979_v35 }
 0x2a7   :  { %1668 = vpow2.f32 %v994_v11  ;;  %v981_v11 = vld [vmem:[#allocation11 + $0x68] sm:$0xff] }
 0x2a8   :  { %743 = vperm.xlu1 %1582, %v2580_v47   ;;  %1670 = vpow2.f32 %v998_v49  ;;  %v1010_v49 = vmul.f32 1.442695, %v981_v11 }
 0x2a9   :  { %1672 = vpow2.f32 %v1002_v18  ;;  %v1128_v18 = vmul.f32 %v2147_v38, %v2278_v55 }
 0x2aa   :  { %1674 = vpow2.f32 %v1006_v41  ;;  %v1130_v41 = vmul.f32 %v2197_v60, %v2310_v4 }
 0x2ab   :  { %v1659_v46 = vpop.eup %1658  ;;  %1676 = vpow2.f32 %v1010_v49 }
 0x2ac   :  { %783 = vperm.xlu1 %1582, %v2597_v59   ;;  %v2615_v47 = vsel %vm2414_vm6, %v1659_v46, 0.0  ;;  %v1661_v59 = vpop.eup %1660 }
 0x2ad   :  { %v2620_v5 = vsel %vm2293_vm13, %v1661_v59, 0.0  ;;  %v1663_v14 = vpop.eup %1662  ;;  %v1134_v15 = vmul.f32 %v2615_v47, %v2409_v7 }
 0x2ae   :  { %v2625_v16 = vsel %vm2334_vm2, %v1663_v14, 0.0  ;;  %v1665_v24 = vpop.eup %1664  ;;  %v1136_v21 = vmul.f32 %v2620_v5, %v2280_v58 }
 0x2af   :  { %v2630_v59 = vsel %vm2388_vm8, %v1665_v24, 0.0  ;;  %v983_v24 = vld [vmem:[#allocation11 + $0x78] sm:$0xff] }
 0x2b0   :  { %v1667_v46 = vpop.eup %1666  ;;  %v1014_v35 = vmul.f32 1.442695, %v983_v24 }
 0x2b1   :  { %v1669_v10 = vpop.eup %1668  ;;  %v2635_v14 = vsel %vm2437_vm11, %v1667_v46, 0.0 }
 0x2b2   :  { %v1021_v40 = vsel %vm2352_vm10, %v1669_v10, 0.0  ;;  %v1671_v33 = vpop.eup %1670  ;;  %1678 = vpow2.f32 %v1014_v35  ;;  %v1132_v10 = vmul.f32 %v2449_v19, %v2356_v31  ;;  %v1129_v19 = vmul.f32 %v2142_v34, %v2274_v28 }
 0x2b3   :  { %v2644_v46 = vsel %vm2402_vm15, %v1671_v33, 0.0  ;;  %v1673_v3 = vpop.eup %1672  ;;  %v1133_v35 = vmul.f32 %v1021_v40, %v2345_v56 }
 0x2b4   :  { %v2651_v11 = vsel %vm2284_vm12, %v1673_v3, 0.0  ;;  %v1675_v38 = vpop.eup %1674  ;;  %v1135_v54 = vmul.f32 %v2644_v46, %v2398_v17 }
 0x2b5   :  { %v2658_v33 = vsel %vm2328_vm0, %v1675_v38, 0.0  ;;  %v1677_v49 = vpop.eup %1676  ;;  %v1137_v63 = vmul.f32 %v2651_v11, %v2276_v51 }
 0x2b6   :  { %v2663_v60 = vsel %vm2376_vm3, %v1677_v49, 0.0 }
 0x2b7   :  { %v1141_v37 = vmul.f32 %v2663_v60, %v2368_v13 }
 0x2bc   :  { %v1679_v3 = vpop.eup %1678 }
 0x2bd   :  { %v2668_v24 = vsel %vm2426_vm5, %v1679_v3, 0.0 }
 0x2be   :  { %1060 = vadd.xlane.f32.xlu0 %v2615_v47 }
 0x2c2   :  { %1064 = vadd.xlane.f32.xlu0 %v2620_v5 }
 0x2c6   :  { %1068 = vadd.xlane.f32.xlu0 %v2625_v16 }
 0x2ca   :  { %1072 = vadd.xlane.f32.xlu0 %v2630_v59 }
 0x2ce   :  { %1076 = vadd.xlane.f32.xlu0 %v2635_v14 }
 0x2d0   :  { %1058 = vadd.xlane.f32.xlu1 %v1021_v40 }
 0x2d2   :  { %1144 = vadd.xlane.f32.xlu0 %v1128_v18  ;;  %v1131_v18 = vmul.f32 %v2152_v39, %v2305_v6 }
 0x2d4   :  { %1062 = vadd.xlane.f32.xlu1 %v2644_v46  ;;  %v1042_v46 = vld [vmem:[#allocation4 + $0x50] sm:$0xff] }
 0x2d6   :  { %1148 = vadd.xlane.f32.xlu0 %v1130_v41 }
 0x2d8   :  { %1066 = vadd.xlane.f32.xlu1 %v2651_v11  ;;  %v1044_v11 = vld [vmem:[#allocation4 + $0x60] sm:$0xff] }
 0x2da   :  { %1152 = vadd.xlane.f32.xlu0 %v1132_v10 }
 0x2dc   :  { %1070 = vadd.xlane.f32.xlu1 %v2658_v33 }
 0x2e0   :  { %1074 = vadd.xlane.f32.xlu1 %v2663_v60  ;;  %v1046_v60 = vld [vmem:[#allocation4 + $0x70] sm:$0xff] }
 0x2e4   :  { %1078 = vadd.xlane.f32.xlu1 %v2668_v24 }
 0x2e8   :  { %1146 = vadd.xlane.f32.xlu1 %v1129_v19 }
 0x2ec   :  { %1150 = vadd.xlane.f32.xlu1 %v1131_v18 }
 0x2f0   :  { %1154 = vadd.xlane.f32.xlu1 %v1133_v35 }
 0x302   :  { %v719_v41 = vpop.permute.xlu1 %718 }
 0x303   :  { %v792_v38 = vsub.f32 %v2274_v28, %v719_v41 }
 0x305   :  { %v809_v10 = vmul.f32 1.442695, %v792_v38 }
 0x306   :  { %v759_v49 = vpop.permute.xlu0 %758 }
 0x307   :  { %1680 = vpow2.f32 %v809_v10  ;;  %v800_v3 = vsub.f32 %v2276_v51, %v759_v49  ;;  %v754_v0 = vpop.permute.xlu1 %753  ;;  %v1038_v51 = vld [vmem:[#allocation4 + $0x30] sm:$0xff] }
 0x308   :  { %v799_v62 = vsub.f32 %v2280_v58, %v754_v0  ;;  %v1143_v58 = vmul.f32 %v2668_v24, %v2419_v32 }
 0x309   :  { %v825_v34 = vmul.f32 1.442695, %v800_v3 }
 0x30a   :  { %v823_v19 = vmul.f32 1.442695, %v799_v62  ;;  %v714_v50 = vpop.permute.xlu0 %713 }
 0x30b   :  { %1682 = vpow2.f32 %v825_v34  ;;  %v791_v39 = vsub.f32 %v2278_v55, %v714_v50  ;;  %v729_v18 = vpop.permute.xlu1 %728 }
 0x30c   :  { %1684 = vpow2.f32 %v823_v19  ;;  %v794_v40 = vsub.f32 %v2305_v6, %v729_v18 }
 0x30d   :  { %v807_v35 = vmul.f32 1.442695, %v791_v39 }
 0x30e   :  { %v813_v28 = vmul.f32 1.442695, %v794_v40  ;;  %v769_v41 = vpop.permute.xlu0 %768 }
 0x30f   :  { %1686 = vpow2.f32 %v807_v35  ;;  %v802_v38 = vsub.f32 %v2316_v36, %v769_v41  ;;  %v724_v10 = vpop.permute.xlu1 %723 }
 0x310   :  { %v793_v49 = vsub.f32 %v2310_v4, %v724_v10  ;;  %1688 = vpow2.f32 %v813_v28 }
 0x311   :  { %v1681_v0 = vpop.eup %1680  ;;  %v829_v62 = vmul.f32 1.442695, %v802_v38 }
 0x312   :  { %v811_v3 = vmul.f32 1.442695, %v793_v49  ;;  %v840_v55 = vsel %vm2124_vm4, %v1681_v0, 0.0  ;;  %vm3036_vm4 = vnez %v2971_v26 }
 0x313   :  { %v764_v50 = vpop.permute.xlu1 %763  ;;  %889 = vadd.xlane.f32.xlu0 %v840_v55 }
 0x314   :  { %1690 = vpow2.f32 %v811_v3  ;;  %v801_v6 = vsub.f32 %v2324_v9, %v764_v50 }
 0x315   :  { %v1683_v34 = vpop.eup %1682  ;;  %1692 = vpow2.f32 %v829_v62 }
 0x316   :  { %v1685_v19 = vpop.eup %1684  ;;  %v827_v39 = vmul.f32 1.442695, %v801_v6  ;;  %v779_v18 = vpop.permute.xlu0 %778  ;;  %v848_v4 = vsel %vm2284_vm12, %v1683_v34, 0.0  ;;  %vm3037_vm12 = vnez %v2973_v30 }
 0x317   :  { %v804_v40 = vsub.f32 %v2368_v13, %v779_v18  ;;  %905 = vadd.xlane.f32.xlu1 %v848_v4  ;;  %v739_v35 = vpop.permute.xlu1 %738  ;;  %v847_v23 = vsel %vm2293_vm13, %v1685_v19, 0.0  ;;  %vm3038_vm13 = vnez %v2975_v57 }
 0x318   :  { %1694 = vpow2.f32 %v827_v39  ;;  %v796_v28 = vsub.f32 %v2345_v56, %v739_v35  ;;  %903 = vadd.xlane.f32.xlu0 %v847_v23 }
 0x319   :  { %v1687_v41 = vpop.eup %1686  ;;  %v833_v38 = vmul.f32 1.442695, %v804_v40 }
 0x31a   :  { %v817_v10 = vmul.f32 1.442695, %v796_v28  ;;  %v839_v49 = vsel %vm3036_vm4, %v1687_v41, 0.0  ;;  %v1689_v0 = vpop.eup %1688 }
 0x31b   :  { %v734_v1 = vpop.permute.xlu1 %733  ;;  %887 = vadd.xlane.f32.xlu1 %v839_v49  ;;  %v842_v55 = vsel %vm3037_vm12, %v1689_v0, 0.0 }
 0x31c   :  { %1696 = vpow2.f32 %v817_v10  ;;  %v795_v62 = vsub.f32 %v2356_v31, %v734_v1 }
 0x31d   :  { %1698 = vpow2.f32 %v833_v38 }
 0x31e   :  { %v1691_v3 = vpop.eup %1690  ;;  %v815_v2 = vmul.f32 1.442695, %v795_v62  ;;  %v789_v50 = vpop.permute.xlu0 %788 }
 0x31f   :  { %v1693_v56 = vpop.eup %1692  ;;  %v774_v6 = vpop.permute.xlu1 %773  ;;  %893 = vadd.xlane.f32.xlu1 %v842_v55  ;;  %v841_v26 = vsel %vm3038_vm13, %v1691_v3, 0.0  ;;  %v806_v31 = vsub.f32 %v2419_v32, %v789_v50 }
 0x320   :  { %1700 = vpow2.f32 %v815_v2  ;;  %v803_v34 = vsub.f32 %v2383_v29, %v774_v6  ;;  %891 = vadd.xlane.f32.xlu0 %v841_v26  ;;  %v850_v18 = vsel %vm2328_vm0, %v1693_v56, 0.0  ;;  %vm3042_vm0 = vmmov %vm3000_vm1 }
 0x321   :  { %v837_v35 = vmul.f32 1.442695, %v806_v31  ;;  %vm3049_vm7 = vmmov %vm3042_vm0 }
 0x322   :  { %v1695_v19 = vpop.eup %1694  ;;  %v831_v39 = vmul.f32 1.442695, %v803_v34  ;;  %vm3051_vm9 = vmmov %vm3042_vm0 }
 0x323   :  { %v749_v30 = vpop.permute.xlu1 %748  ;;  %909 = vadd.xlane.f32.xlu1 %v850_v18  ;;  %v849_v4 = vsel %vm2334_vm2, %v1695_v19, 0.0  ;;  %v1139_v19 = vmul.f32 %v2658_v33, %v2316_v36  ;;  %v1040_v36 = vld [vmem:[#allocation4 + $0x40] sm:$0xff]  ;;  %vm3043_vm2 = vmmov %vm3042_vm0 }
 0x324   :  { %1702 = vpow2.f32 %v831_v39  ;;  %v798_v57 = vsub.f32 %v2398_v17, %v749_v30  ;;  %907 = vadd.xlane.f32.xlu0 %v849_v4  ;;  %v1138_v17 = vmul.f32 %v2625_v16, %v2324_v9  ;;  %v1142_v9 = vmul.f32 %v2635_v14, %v2433_v20  ;;  %v1112_v39 = vld [vmem:[#allocation5] sm:$0xff]  ;;  %v1039_v4 = vld [vmem:[#allocation4 + $0x38] sm:$0xff]  ;;  %vm3052_vm4 = vmmov %vm3042_vm0 }
 0x325   :  { %vm3053_vm12 = vmmov %vm3042_vm0 }
 0x326   :  { %v1697_v40 = vpop.eup %1696  ;;  %v821_v23 = vmul.f32 1.442695, %v798_v57  ;;  %vm3054_vm13 = vmmov %vm3042_vm0 }
 0x327   :  { %v744_v28 = vpop.permute.xlu1 %743  ;;  %v844_v41 = vsel %vm2352_vm10, %v1697_v40, 0.0  ;;  %v1699_v38 = vpop.eup %1698  ;;  %vm3044_vm10 = vmmov %vm3042_vm0 }
 0x328   :  { %1704 = vpow2.f32 %v821_v23  ;;  %v797_v8 = vsub.f32 %v2409_v7, %v744_v28  ;;  %897 = vadd.xlane.f32.xlu1 %v844_v41  ;;  %v852_v1 = vsel %vm2376_vm3, %v1699_v38, 0.0  ;;  %v1140_v7 = vmul.f32 %v2630_v59, %v2383_v29  ;;  %v1041_v41 = vld [vmem:[#allocation4 + $0x48] sm:$0xff]  ;;  %vm3046_vm3 = vmmov %vm3042_vm0 }
 0x329   :  { %1706 = vpow2.f32 %v837_v35  ;;  %v1114_v35 = vld [vmem:[#allocation5 + $0x10] sm:$0xff] }
 0x32a   :  { %v1701_v10 = vpop.eup %1700  ;;  %v819_v44 = vmul.f32 1.442695, %v797_v8 }
 0x32b   :  { %v784_v49 = vpop.permute.xlu1 %783  ;;  %v843_v0 = vsel %vm2361_vm14, %v1701_v10, 0.0  ;;  %vm3045_vm14 = vmmov %vm3042_vm0  ;;  %v1116_v10 = vld [vmem:[#allocation5 + $0x20] sm:$0xff] }
 0x32c   :  { %1708 = vpow2.f32 %v819_v44  ;;  %v805_v62 = vsub.f32 %v2433_v20, %v784_v49  ;;  %895 = vadd.xlane.f32.xlu0 %v843_v0  ;;  %913 = vadd.xlane.f32.xlu1 %v852_v1  ;;  %v1037_v20 = vld [vmem:[#allocation4 + $0x28] sm:$0xff]  ;;  %v1043_v0 = vld [vmem:[#allocation4 + $0x58] sm:$0xff] }
 0x32e   :  { %v1703_v27 = vpop.eup %1702  ;;  %v835_v3 = vmul.f32 1.442695, %v805_v62 }
 0x32f   :  { %v851_v2 = vsel %vm2388_vm8, %v1703_v27, 0.0  ;;  %vm3041_vm8 = vmmov %vm3000_vm1 }
 0x330   :  { %1710 = vpow2.f32 %v835_v3  ;;  %911 = vadd.xlane.f32.xlu0 %v851_v2  ;;  %v1045_v3 = vld [vmem:[#allocation4 + $0x68] sm:$0xff] }
 0x332   :  { %v1705_v55 = vpop.eup %1704 }
 0x333   :  { %v846_v25 = vsel %vm2402_vm15, %v1705_v55, 0.0  ;;  %v1707_v56 = vpop.eup %1706  ;;  %vm3047_vm15 = vmmov %vm3042_vm0 }
 0x334   :  { %901 = vadd.xlane.f32.xlu1 %v846_v25  ;;  %v854_v6 = vsel %vm2426_vm5, %v1707_v56, 0.0  ;;  %vm3039_vm5 = vmmov %vm3000_vm1  ;;  %v1047_v25 = vld [vmem:[#allocation4 + $0x78] sm:$0xff] }
 0x336   :  { %v1709_v42 = vpop.eup %1708 }
 0x337   :  { %v845_v50 = vsel %vm2414_vm6, %v1709_v42, 0.0  ;;  %vm3040_vm6 = vmmov %vm3000_vm1 }
 0x338   :  { %899 = vadd.xlane.f32.xlu0 %v845_v50  ;;  %917 = vadd.xlane.f32.xlu1 %v854_v6  ;;  %vm3050_vm1 = vmmov %vm3042_vm0  ;;  %v1113_v50 = vld [vmem:[#allocation5 + $0x8] sm:$0xff] }
 0x33a   :  { %v1711_v26 = vpop.eup %1710 }
 0x33b   :  { %v853_v34 = vsel %vm2437_vm11, %v1711_v26, 0.0  ;;  %vm3048_vm11 = vmmov %vm3042_vm0 }
 0x33c   :  { %915 = vadd.xlane.f32.xlu0 %v853_v34  ;;  %1158 = vadd.xlane.f32.xlu1 %v1135_v54  ;;  %v1115_v54 = vld [vmem:[#allocation5 + $0x18] sm:$0xff] }
 0x340   :  { %1156 = vadd.xlane.f32.xlu0 %v1134_v15  ;;  %1162 = vadd.xlane.f32.xlu1 %v1137_v63  ;;  %v1117_v15 = vld [vmem:[#allocation5 + $0x28] sm:$0xff] }
 0x344   :  { %1160 = vadd.xlane.f32.xlu0 %v1136_v21  ;;  %1166 = vadd.xlane.f32.xlu1 %v1139_v19 }
 0x348   :  { %1164 = vadd.xlane.f32.xlu0 %v1138_v17  ;;  %1170 = vadd.xlane.f32.xlu1 %v1141_v37  ;;  %v3056_v17 = vsub.f32 %v2452_v45, %v2457_v52 }
 0x34a   :  { %v681_v37 = vmul.f32 1.442695, %v3056_v17 }
 0x34b   :  { %v1061_v47 = vpop.xlane.xlu0 %1060 }
 0x34c   :  { %v1086_v5 = vadd.f32 %v1061_v47, %v1038_v51  ;;  %1168 = vadd.xlane.f32.xlu0 %v1140_v7  ;;  %1174 = vadd.xlane.f32.xlu1 %v1143_v58  ;;  %1712 = vpow2.f32 %v681_v37  ;;  %v3057_v51 = vsub.f32 %v2462_v61, %v2476_v43  ;;  %v3058_v58 = vsub.f32 %v2469_v22, %v2479_v12  ;;  %v3066_v22 = vld [vmem:[#allocation20_spill] sm:$0xff]  ;;  %v3067_v12 = vld [vmem:[#allocation22_spill] sm:$0xff] }
 0x34e   :  { %1102 = vst.msk [vmem:[#allocation4 + $0x30] sm:$0xff] %vm3039_vm5, %v1086_v5  ;;  %vm3055_vm5 = vmmov %vm3042_vm0  ;;  %v697_v7 = vmul.f32 1.442695, %v3057_v51  ;;  %v695_v47 = vmul.f32 1.442695, %v3058_v58  ;;  %v3059_v5 = vsub.f32 %v2454_v48, %v2460_v53  ;;  %v3069_v48 = vld [vmem:[#allocation21_spill] sm:$0xff] }
 0x34f   :  { %v1065_v13 = vpop.xlane.xlu0 %1064  ;;  %v3070_v53 = vld [vmem:[#allocation24_spill] sm:$0xff] }
 0x350   :  { %v1088_v16 = vadd.f32 %v1065_v13, %v1040_v36  ;;  %1172 = vadd.xlane.f32.xlu0 %v1142_v9  ;;  %v679_v36 = vmul.f32 1.442695, %v3059_v5  ;;  %1714 = vpow2.f32 %v697_v7  ;;  %v3060_v9 = vld [vmem:[#allocation16_spill] sm:$0xff]  ;;  %v3061_v13 = vld [vmem:[#allocation18_spill] sm:$0xff]  ;;  %v866_v5 = vld [vmem:[#allocation3 + $0x58] sm:$0xff] }
 0x351   :  { %1716 = vpow2.f32 %v695_v47  ;;  %v3062_v45 = vsub.f32 %v3060_v9, %v3061_v13 }
 0x352   :  { %1104 = vst.msk [vmem:[#allocation4 + $0x40] sm:$0xff] %vm3040_vm6, %v1088_v16  ;;  %1718 = vpow2.f32 %v679_v36  ;;  %v3063_v16 = vld [vmem:[#allocation17_spill] sm:$0xff]  ;;  %vm3075_vm6 = vmmov %vm3042_vm0 }
 0x353   :  { %v1069_v29 = vpop.xlane.xlu0 %1068  ;;  %v685_v52 = vmul.f32 1.442695, %v3062_v45 }
 0x354   :  { %v1090_v59 = vadd.f32 %v1069_v29, %v1042_v46  ;;  %v3064_v46 = vld [vmem:[#allocation19_spill] sm:$0xff] }
 0x355   :  { %v3065_v29 = vsub.f32 %v3063_v16, %v3064_v46  ;;  %1720 = vpow2.f32 %v685_v52  ;;  %v865_v52 = vld [vmem:[#allocation3 + $0x50] sm:$0xff]  ;;  %v3087_v16 = vld [vmem:[#allocation31_spill] sm:$0xff] }
 0x356   :  { %1106 = vst.msk [vmem:[#allocation4 + $0x50] sm:$0xff] %vm3041_vm8, %v1090_v59  ;;  %v1713_v43 = vpop.eup %1712  ;;  %v856_v59 = vld [vmem:[#allocation3 + $0x8] sm:$0xff]  ;;  %vm3082_vm8 = vmmov %vm3042_vm0  ;;  %v3088_v46 = vld [vmem:[#allocation34_spill] sm:$0xff] }
 0x357   :  { %v1073_v32 = vpop.xlane.xlu0 %1072  ;;  %v683_v61 = vmul.f32 1.442695, %v3065_v29  ;;  %v3089_v29 = vsub.f32 %v3087_v16, %v3088_v46  ;;  %v862_v46 = vld [vmem:[#allocation3 + $0x38] sm:$0xff] }
 0x358   :  { %v1092_v33 = vadd.f32 %v1073_v32, %v1044_v11  ;;  %v3068_v11 = vsub.f32 %v3066_v22, %v3067_v12 }
 0x359   :  { %1722 = vpow2.f32 %v683_v61  ;;  %v693_v61 = vmul.f32 1.442695, %v3089_v29 }
 0x35a   :  { %1108 = vst.msk [vmem:[#allocation4 + $0x60] sm:$0xff] %vm3042_vm0, %v1092_v33  ;;  %v701_v32 = vmul.f32 1.442695, %v3068_v11  ;;  %v3071_v33 = vsub.f32 %v3069_v48, %v3070_v53  ;;  %v3093_v48 = vld [vmem:[#allocation36_spill] sm:$0xff] }
 0x35b   :  { %v1077_v24 = vpop.xlane.xlu0 %1076 }
 0x35c   :  { %v1094_v14 = vadd.f32 %v1077_v24, %v1046_v60  ;;  %v699_v60 = vmul.f32 1.442695, %v3071_v33  ;;  %v872_v24 = vmul.f32 %v1713_v43, %v856_v59  ;;  %1724 = vpow2.f32 %v701_v32  ;;  %v3092_v32 = vld [vmem:[#allocation33_spill] sm:$0xff] }
 0x35d   :  { %v1059_v31 = vpop.xlane.xlu1 %1058  ;;  %v3094_v53 = vsub.f32 %v3092_v32, %v3093_v48 }
 0x35e   :  { %1110 = vst.msk [vmem:[#allocation4 + $0x70] sm:$0xff] %vm3043_vm2, %v1094_v14  ;;  %v1085_v18 = vadd.f32 %v1059_v31, %v1037_v20  ;;  %v1715_v20 = vpop.eup %1714  ;;  %v864_v31 = vld [vmem:[#allocation3 + $0x48] sm:$0xff]  ;;  %1726 = vpow2.f32 %v699_v60  ;;  %vm3086_vm2 = vmmov %vm3042_vm0 }
 0x35f   :  { %v1145_v30 = vpop.xlane.xlu0 %1144  ;;  %v691_v33 = vmul.f32 1.442695, %v3094_v53 }
 0x360   :  { %1101 = vst.msk [vmem:[#allocation4 + $0x28] sm:$0xff] %vm3044_vm10, %v1085_v18  ;;  %v1176_v57 = vadd.f32 %v1145_v30, %v1112_v39  ;;  %v1717_v39 = vpop.eup %1716  ;;  %v863_v30 = vld [vmem:[#allocation3 + $0x40] sm:$0xff]  ;;  %vm3090_vm10 = vmmov %vm3042_vm0 }
 0x361   :  { %v1063_v40 = vpop.xlane.xlu1 %1062 }
 0x362   :  { %1192 = vst.msk [vmem:[#allocation5] sm:$0xff] %vm3045_vm14, %v1176_v57  ;;  %v1087_v23 = vadd.f32 %v1063_v40, %v1039_v4  ;;  %v3072_v4 = vld [vmem:[#allocation23_spill] sm:$0xff]  ;;  %v3073_v57 = vld [vmem:[#allocation26_spill] sm:$0xff]  ;;  %vm3091_vm14 = vmmov %vm3042_vm0 }
 0x363   :  { %v1149_v28 = vpop.xlane.xlu0 %1148  ;;  %v3074_v40 = vsub.f32 %v3072_v4, %v3073_v57 }
 0x364   :  { %1103 = vst.msk [vmem:[#allocation4 + $0x38] sm:$0xff] %vm3046_vm3, %v1087_v23  ;;  %v1178_v38 = vadd.f32 %v1149_v28, %v1114_v35  ;;  %v880_v23 = vmul.f32 %v1715_v20, %v864_v31  ;;  %v1719_v28 = vpop.eup %1718  ;;  %v860_v20 = vld [vmem:[#allocation3 + $0x28] sm:$0xff]  ;;  %v3095_v31 = vld [vmem:[#allocation35_spill] sm:$0xff]  ;;  %vm3098_vm3 = vmmov %vm3042_vm0 }
 0x365   :  { %v1067_v8 = vpop.xlane.xlu1 %1066  ;;  %v689_v35 = vmul.f32 1.442695, %v3074_v40 }
 0x366   :  { %1194 = vst.msk [vmem:[#allocation5 + $0x10] sm:$0xff] %vm3047_vm15, %v1178_v38  ;;  %v1089_v44 = vadd.f32 %v1067_v8, %v1041_v41  ;;  %v879_v38 = vmul.f32 %v1717_v39, %v863_v30  ;;  %v855_v8 = vld [vmem:[#allocation3] sm:$0xff]  ;;  %v3096_v39 = vld [vmem:[#allocation38_spill] sm:$0xff]  ;;  %vm3099_vm15 = vmmov %vm3042_vm0 }
 0x367   :  { %v1153_v49 = vpop.xlane.xlu0 %1152  ;;  %1728 = vpow2.f32 %v689_v35 }
 0x368   :  { %1105 = vst.msk [vmem:[#allocation4 + $0x48] sm:$0xff] %vm3048_vm11, %v1089_v44  ;;  %v1180_v1 = vadd.f32 %v1153_v49, %v1116_v10  ;;  %v3076_v10 = vld [vmem:[#allocation25_spill] sm:$0xff]  ;;  %v3077_v44 = vld [vmem:[#allocation28_spill] sm:$0xff]  ;;  %vm3103_vm11 = vmmov %vm3042_vm0 }
 0x369   :  { %v1071_v62 = vpop.xlane.xlu1 %1070  ;;  %v3078_v49 = vsub.f32 %v3076_v10, %v3077_v44  ;;  %v859_v10 = vld [vmem:[#allocation3 + $0x20] sm:$0xff]  ;;  %v2820_v44 = vld [vmem:[#allocation4 + $0x18] sm:$0xff] }
 0x36a   :  { %1196 = vst.msk [vmem:[#allocation5 + $0x20] sm:$0xff] %vm3049_vm7, %v1180_v1  ;;  %v1091_v27 = vadd.f32 %v1071_v62, %v1043_v0  ;;  %vm3104_vm7 = vmmov %vm3042_vm0 }
 0x36b   :  { %v687_v0 = vmul.f32 1.442695, %v3078_v49 }
 0x36c   :  { %1107 = vst.msk [vmem:[#allocation4 + $0x58] sm:$0xff] %vm3050_vm1, %v1091_v27  ;;  %v3079_v27 = vld [vmem:[#allocation27_spill] sm:$0xff]  ;;  %vm3105_vm1 = vmmov %vm3042_vm0 }
 0x36d   :  { %v1075_v2 = vpop.xlane.xlu1 %1074  ;;  %1730 = vpow2.f32 %v687_v0 }
 0x36e   :  { %v1093_v55 = vadd.f32 %v1075_v2, %v1045_v3  ;;  %v3080_v3 = vld [vmem:[#allocation30_spill] sm:$0xff] }
 0x36f   :  { %v3081_v2 = vsub.f32 %v3079_v27, %v3080_v3  ;;  %v1212_v27 = vld [vmem:[#allocation2 + $0x8] sm:$0xff] }
 0x370   :  { %1109 = vst.msk [vmem:[#allocation4 + $0x68] sm:$0xff] %vm3051_vm9, %v1093_v55  ;;  %v3100_v3 = vld [vmem:[#allocation37_spill] sm:$0xff]  ;;  %vm3106_vm9 = vmmov %vm3042_vm0 }
 0x371   :  { %v1079_v56 = vpop.xlane.xlu1 %1078  ;;  %v705_v55 = vmul.f32 1.442695, %v3081_v2  ;;  %v3101_v2 = vld [vmem:[#allocation39_spill] sm:$0xff] }
 0x372   :  { %v1095_v42 = vadd.f32 %v1079_v56, %v1047_v25  ;;  %v871_v56 = vmul.f32 %v1719_v28, %v855_v8  ;;  %v868_v8 = vld [vmem:[#allocation3 + $0x68] sm:$0xff] }
 0x373   :  { %1732 = vpow2.f32 %v705_v55  ;;  %v3102_v55 = vsub.f32 %v3100_v3, %v3101_v2 }
 0x374   :  { %1111 = vst.msk [vmem:[#allocation4 + $0x78] sm:$0xff] %vm3052_vm4, %v1095_v42  ;;  %v1721_v42 = vpop.eup %1720  ;;  %vm3107_vm4 = vmmov %vm3042_vm0 }
 0x375   :  { %v1147_v6 = vpop.xlane.xlu1 %1146 }
 0x376   :  { %v1177_v26 = vadd.f32 %v1147_v6, %v1113_v50  ;;  %v858_v6 = vld [vmem:[#allocation3 + $0x18] sm:$0xff] }
 0x377   :  { %v874_v51 = vmul.f32 %v1721_v42, %v858_v6 }
 0x378   :  { %1193 = vst.msk [vmem:[#allocation5 + $0x8] sm:$0xff] %vm3053_vm12, %v1177_v26  ;;  %v1723_v26 = vpop.eup %1722  ;;  %vm3108_vm12 = vmmov %vm3042_vm0 }
 0x379   :  { %v1151_v34 = vpop.xlane.xlu1 %1150  ;;  %v1725_v7 = vpop.eup %1724 }
 0x37a   :  { %v1179_v63 = vadd.f32 %v1151_v34, %v1115_v54  ;;  %v857_v34 = vld [vmem:[#allocation3 + $0x10] sm:$0xff]  ;;  %v1727_v36 = vpop.eup %1726  ;;  %v882_v59 = vmul.f32 %v1725_v7, %v866_v5 }
 0x37b   :  { %v873_v47 = vmul.f32 %v1723_v26, %v857_v34  ;;  %v881_v12 = vmul.f32 %v1727_v36, %v865_v52  ;;  %v1729_v11 = vpop.eup %1728 }
 0x37c   :  { %1195 = vst.msk [vmem:[#allocation5 + $0x18] sm:$0xff] %vm3054_vm13, %v1179_v63  ;;  %v2797_v63 = vld [vmem:[#allocation4 + $0x8] sm:$0xff]  ;;  %v1731_v40 = vpop.eup %1730  ;;  %vm3109_vm13 = vmmov %vm3042_vm0 }
 0x37d   :  { %v1155_v21 = vpop.xlane.xlu1 %1154  ;;  %v1356_v9 = vadd.f32 1e-12, %v2797_v63  ;;  %v1733_v35 = vpop.eup %1732  ;;  %v875_v6 = vmul.f32 %v1731_v40, %v859_v10  ;;  %v861_v40 = vld [vmem:[#allocation3 + $0x30] sm:$0xff] }
 0x37e   :  { %v1181_v19 = vadd.f32 %v1155_v21, %v1117_v15  ;;  %v3083_v21 = vld [vmem:[#allocation29_spill] sm:$0xff] }
 0x380   :  { %1197 = vst.msk [vmem:[#allocation5 + $0x28] sm:$0xff] %vm3055_vm5, %v1181_v19  ;;  %v3084_v19 = vld [vmem:[#allocation32_spill] sm:$0xff]  ;;  %vm3110_vm5 = vmmov %vm3042_vm0 }
 0x381   :  { %v3085_v17 = vsub.f32 %v3083_v21, %v3084_v19  ;;  %v867_v21 = vld [vmem:[#allocation3 + $0x60] sm:$0xff] }
 0x383   :  { %v703_v37 = vmul.f32 1.442695, %v3085_v17  ;;  %v2830_v17 = vld [vmem:[#allocation4 + $0x20] sm:$0xff] }
 0x384   :  { %v1359_v52 = vadd.f32 1e-12, %v2830_v17 }
 0x3a0   :  { %v890_v14 = vpop.xlane.xlu0 %889 }
 0x3a1   :  { %v920_v18 = vadd.f32 %v890_v14, %v872_v24  ;;  %v2812_v14 = vld [vmem:[#allocation4] sm:$0xff] }
 0x3a3   :  { %937 = vst.msk [vmem:[#allocation3 + $0x8] sm:$0xff] %vm3075_vm6, %v920_v18  ;;  %v3097_v18 = vsub.f32 %v3095_v31, %v3096_v39  ;;  %v2840_v39 = vld [vmem:[#allocation4 + $0x30] sm:$0xff]  ;;  %vm3111_vm6 = vmmov %vm3042_vm0 }
 0x3a4   :  { %v906_v41 = vpop.xlane.xlu1 %905 }
 0x3a5   :  { %v928_v1 = vadd.f32 %v906_v41, %v880_v23  ;;  %v904_v62 = vpop.xlane.xlu0 %903  ;;  %v709_v30 = vmul.f32 1.442695, %v3097_v18  ;;  %v876_v23 = vmul.f32 %v1729_v11, %v860_v20  ;;  %v1355_v41 = vadd.f32 1e-12, %v2812_v14  ;;  %v870_v20 = vld [vmem:[#allocation3 + $0x78] sm:$0xff] }
 0x3a6   :  { %v927_v25 = vadd.f32 %v904_v62, %v879_v38  ;;  %v2822_v62 = vld [vmem:[#allocation4 + $0x10] sm:$0xff] }
 0x3a7   :  { %945 = vst.msk [vmem:[#allocation3 + $0x48] sm:$0xff] %vm3082_vm8, %v928_v1  ;;  %v1357_v19 = vadd.f32 1e-12, %v2822_v62  ;;  %vm3112_vm8 = vmmov %vm3042_vm0 }
 0x3a8   :  { %944 = vst.msk [vmem:[#allocation3 + $0x40] sm:$0xff] %vm3042_vm0, %v927_v25  ;;  %v888_v50 = vpop.xlane.xlu1 %887  ;;  %v707_v25 = vmul.f32 1.442695, %v3102_v55 }
 0x3a9   :  { %v919_v54 = vadd.f32 %v888_v50, %v871_v56  ;;  %v884_v50 = vmul.f32 %v1733_v35, %v868_v8  ;;  %v1213_v8 = vld [vmem:[#allocation2 + $0x10] sm:$0xff] }
 0x3aa   :  { %v1228_v15 = vld [vmem:[#allocation3 + $0x8] sm:$0xff] }
 0x3ab   :  { %1734 = vlog2.f32 %v1228_v15  ;;  %936 = vst.msk [vmem:[#allocation3] sm:$0xff] %vm3086_vm2, %v919_v54  ;;  %v1358_v54 = vadd.f32 1e-12, %v2820_v44  ;;  %vm3113_vm2 = vmmov %vm3042_vm0 }
 0x3ac   :  { %v894_v58 = vpop.xlane.xlu1 %893  ;;  %1736 = vpow2.f32 %v703_v37 }
 0x3ad   :  { %v922_v13 = vadd.f32 %v894_v58, %v874_v51  ;;  %v892_v45 = vpop.xlane.xlu0 %891  ;;  %1738 = vrcp.f32 %v1356_v9 }
 0x3ae   :  { %v921_v43 = vadd.f32 %v892_v45, %v873_v47  ;;  %1740 = vpow2.f32 %v693_v61  ;;  %v1324_v47 = vld [vmem:[#allocation5 + $0x8] sm:$0xff] }
 0x3af   :  { %939 = vst.msk [vmem:[#allocation3 + $0x18] sm:$0xff] %vm3090_vm10, %v922_v13  ;;  %v1236_v9 = vld [vmem:[#allocation3 + $0x48] sm:$0xff]  ;;  %v1235_v32 = vld [vmem:[#allocation3 + $0x40] sm:$0xff]  ;;  %vm3114_vm10 = vmmov %vm3042_vm0 }
 0x3b0   :  { %938 = vst.msk [vmem:[#allocation3 + $0x10] sm:$0xff] %vm3091_vm14, %v921_v43  ;;  %v910_v22 = vpop.xlane.xlu1 %909  ;;  %vm3115_vm14 = vmmov %vm3042_vm0 }
 0x3b1   :  { %v930_v60 = vadd.f32 %v910_v22, %v882_v59  ;;  %v908_v24 = vpop.xlane.xlu0 %907  ;;  %v1211_v59 = vld [vmem:[#allocation2] sm:$0xff]  ;;  %v2836_v22 = vld [vmem:[#allocation4 + $0x28] sm:$0xff] }
 0x3b2   :  { %v1227_v4 = vld [vmem:[#allocation3] sm:$0xff]  ;;  %v929_v57 = vadd.f32 %v908_v24, %v881_v12  ;;  %v1360_v18 = vadd.f32 1e-12, %v2836_v22 }
 0x3b3   :  { %1742 = vlog2.f32 %v1227_v4  ;;  %947 = vst.msk [vmem:[#allocation3 + $0x58] sm:$0xff] %vm3098_vm3, %v930_v60  ;;  %vm3116_vm3 = vmmov %vm3042_vm0 }
 0x3b4   :  { %946 = vst.msk [vmem:[#allocation3 + $0x50] sm:$0xff] %vm3099_vm15, %v929_v57  ;;  %1744 = vpow2.f32 %v691_v33  ;;  %vm3117_vm15 = vmmov %vm3042_vm0 }
 0x3b5   :  { %v1735_v28 = vpop.eup %1734  ;;  %v898_v38 = vpop.xlane.xlu1 %897  ;;  %1746 = vpow2.f32 %v709_v30 }
 0x3b6   :  { %v1246_v49 = vmul.f32 0.6931472, %v1735_v28  ;;  %v1230_v0 = vld [vmem:[#allocation3 + $0x18] sm:$0xff]  ;;  %v924_v1 = vadd.f32 %v898_v38, %v876_v23  ;;  %v1737_v26 = vpop.eup %1736  ;;  %v1323_v28 = vld [vmem:[#allocation5] sm:$0xff] }
 0x3b7   :  { %1748 = vlog2.f32 %v1230_v0  ;;  %v1229_v56 = vld [vmem:[#allocation3 + $0x10] sm:$0xff]  ;;  %v1739_v58 = vpop.eup %1738  ;;  %v883_v13 = vmul.f32 %v1737_v26, %v867_v21  ;;  %v1214_v23 = vld [vmem:[#allocation2 + $0x18] sm:$0xff] }
 0x3b8   :  { %v1276_v42 = vadd.f32 %v1246_v49, %v1212_v27  ;;  %1750 = vlog2.f32 %v1229_v56  ;;  %941 = vst.msk [vmem:[#allocation3 + $0x28] sm:$0xff] %vm3103_vm11, %v924_v1  ;;  %v1741_v5 = vpop.eup %1740  ;;  %v1326_v21 = vld [vmem:[#allocation5 + $0x18] sm:$0xff]  ;;  %vm3118_vm11 = vmmov %vm3042_vm0 }
 0x3b9   :  { %1752 = vrcp.f32 %v1355_v41  ;;  %v914_v34 = vpop.xlane.xlu1 %913  ;;  %v896_v15 = vpop.xlane.xlu0 %895  ;;  %v878_v53 = vmul.f32 %v1741_v5, %v862_v46 }
 0x3ba   :  { %v1308_v37 = vmul.f32 %v2797_v63, %v1276_v42  ;;  %v932_v51 = vadd.f32 %v914_v34, %v884_v50  ;;  %v923_v7 = vadd.f32 %v896_v15, %v875_v6  ;;  %1754 = vpow2.f32 %v707_v25  ;;  %v1238_v60 = vld [vmem:[#allocation3 + $0x58] sm:$0xff]  ;;  %v869_v42 = vld [vmem:[#allocation3 + $0x70] sm:$0xff]  ;;  %v2846_v50 = vld [vmem:[#allocation4 + $0x40] sm:$0xff] }
 0x3bb   :  { %1756 = vrcp.f32 %v1358_v54  ;;  %v1237_v0 = vld [vmem:[#allocation3 + $0x50] sm:$0xff]  ;;  %v2849_v15 = vld [vmem:[#allocation4 + $0x38] sm:$0xff] }
 0x3bc   :  { %v1340_v36 = vsub.f32 %v1308_v37, %v1324_v47  ;;  %949 = vst.msk [vmem:[#allocation3 + $0x68] sm:$0xff] %vm3104_vm7, %v932_v51  ;;  %1758 = vrcp.f32 %v1357_v19  ;;  %v1119_v51 = vld [vmem:[#allocation5 + $0x38] sm:$0xff]  ;;  %v2852_v47 = vld [vmem:[#allocation4 + $0x48] sm:$0xff]  ;;  %v1362_v46 = vadd.f32 1e-12, %v2849_v15  ;;  %vm3119_vm7 = vmmov %vm3042_vm0 }
 0x3bd   :  { %940 = vst.msk [vmem:[#allocation3 + $0x20] sm:$0xff] %vm3105_vm1, %v923_v7  ;;  %v1743_v45 = vpop.eup %1742  ;;  %v912_v16 = vpop.xlane.xlu0 %911  ;;  %1760 = vlog2.f32 %v1236_v9  ;;  %vm3120_vm1 = vmmov %vm3042_vm0 }
 0x3be   :  { %v1374_v63 = vmul.f32 %v1739_v58, %v1340_v36  ;;  %v1244_v29 = vmul.f32 0.6931472, %v1743_v45  ;;  %v931_v61 = vadd.f32 %v912_v16, %v883_v13  ;;  %v1745_v43 = vpop.eup %1744  ;;  %v1325_v58 = vld [vmem:[#allocation5 + $0x10] sm:$0xff]  ;;  %v1363_v13 = vadd.f32 1e-12, %v2846_v50 }
 0x3bf   :  { %v1232_v12 = vld [vmem:[#allocation3 + $0x28] sm:$0xff]  ;;  %v1747_v11 = vpop.eup %1746  ;;  %v877_v25 = vmul.f32 %v1745_v43, %v861_v40 }
 0x3c0   :  { %1404 = vst.msk [vmem:[#allocation12 + $0x8] sm:$0xff] %vm3106_vm9, %v1374_v63  ;;  %v1275_v48 = vadd.f32 %v1244_v29, %v1211_v59  ;;  %1762 = vlog2.f32 %v1232_v12  ;;  %v886_v1 = vmul.f32 %v1747_v11, %v870_v20  ;;  %v1121_v43 = vld [vmem:[#allocation5 + $0x48] sm:$0xff]  ;;  %v1364_v12 = vadd.f32 1e-12, %v2852_v47  ;;  %vm3121_vm9 = vmmov %vm3042_vm0 }
 0x3c1   :  { %948 = vst.msk [vmem:[#allocation3 + $0x60] sm:$0xff] %vm3107_vm4, %v931_v61  ;;  %v1749_v33 = vpop.eup %1748  ;;  %1764 = vrcp.f32 %v1359_v52  ;;  %v902_v24 = vpop.xlane.xlu1 %901  ;;  %v1220_v40 = vld [vmem:[#allocation2 + $0x48] sm:$0xff]  ;;  %vm3122_vm4 = vmmov %vm3042_vm0 }
 0x3c2   :  { %v1751_v31 = vpop.eup %1750  ;;  %v1307_v30 = vmul.f32 %v2812_v14, %v1275_v48  ;;  %v1250_v4 = vmul.f32 0.6931472, %v1749_v33  ;;  %v926_v57 = vadd.f32 %v902_v24, %v878_v53  ;;  %1766 = vlog2.f32 %v1235_v32  ;;  %v1118_v53 = vld [vmem:[#allocation5 + $0x30] sm:$0xff]  ;;  %v1216_v33 = vld [vmem:[#allocation2 + $0x28] sm:$0xff]  ;;  %v2864_v24 = vld [vmem:[#allocation4 + $0x58] sm:$0xff] }
 0x3c3   :  { %v1753_v35 = vpop.eup %1752  ;;  %v1248_v41 = vmul.f32 0.6931472, %v1751_v31  ;;  %1768 = vlog2.f32 %v1238_v60  ;;  %v1361_v14 = vadd.f32 1e-12, %v2840_v39  ;;  %v1240_v2 = vld [vmem:[#allocation3 + $0x68] sm:$0xff]  ;;  %v2862_v60 = vld [vmem:[#allocation4 + $0x50] sm:$0xff] }
 0x3c4   :  { %v1231_v38 = vld [vmem:[#allocation3 + $0x20] sm:$0xff]  ;;  %v1339_v10 = vsub.f32 %v1307_v30, %v1323_v28  ;;  %v1278_v49 = vadd.f32 %v1250_v4, %v1214_v23  ;;  %943 = vst.msk [vmem:[#allocation3 + $0x38] sm:$0xff] %vm3108_vm12, %v926_v57  ;;  %v1755_v27 = vpop.eup %1754  ;;  %v1123_v28 = vld [vmem:[#allocation5 + $0x58] sm:$0xff]  ;;  %vm3123_vm12 = vmmov %vm3042_vm0 }
 0x3c5   :  { %v1277_v3 = vadd.f32 %v1248_v41, %v1213_v8  ;;  %1770 = vlog2.f32 %v1231_v38  ;;  %v918_v55 = vpop.xlane.xlu1 %917  ;;  %v900_v56 = vpop.xlane.xlu0 %899  ;;  %v1365_v38 = vadd.f32 1e-12, %v2862_v60  ;;  %v1366_v8 = vadd.f32 1e-12, %v2864_v24 }
 0x3c6   :  { %1772 = vrcp.f32 %v1360_v18  ;;  %v1372_v6 = vmul.f32 %v1753_v35, %v1339_v10  ;;  %v1310_v26 = vmul.f32 %v2820_v44, %v1278_v49  ;;  %v934_v54 = vadd.f32 %v918_v55, %v886_v1  ;;  %v1757_v34 = vpop.eup %1756 }
 0x3c7   :  { %v1309_v19 = vmul.f32 %v2822_v62, %v1277_v3  ;;  %1774 = vlog2.f32 %v1237_v0  ;;  %v925_v37 = vadd.f32 %v900_v56, %v877_v25  ;;  %v1759_v7 = vpop.eup %1758  ;;  %v885_v44 = vmul.f32 %v1755_v27, %v869_v42  ;;  %v1120_v0 = vld [vmem:[#allocation5 + $0x40] sm:$0xff]  ;;  %v2873_v27 = vld [vmem:[#allocation4 + $0x68] sm:$0xff] }
 0x3c8   :  { %1403 = vst.msk [vmem:[#allocation12] sm:$0xff] %vm3109_vm13, %v1372_v6  ;;  %v1342_v5 = vsub.f32 %v1310_v26, %v1326_v21  ;;  %1776 = vlog2.f32 %v1240_v2  ;;  %v1239_v36 = vld [vmem:[#allocation3 + $0x60] sm:$0xff]  ;;  %v1761_v9 = vpop.eup %1760  ;;  %vm3124_vm13 = vmmov %vm3042_vm0 }
 0x3c9   :  { %951 = vst.msk [vmem:[#allocation3 + $0x78] sm:$0xff] %vm3110_vm5, %v934_v54  ;;  %1778 = vrcp.f32 %v1361_v14  ;;  %v1341_v62 = vsub.f32 %v1309_v19, %v1325_v58  ;;  %v1159_v45 = vpop.xlane.xlu1 %1158  ;;  %v916_v52 = vpop.xlane.xlu0 %915  ;;  %v1262_v31 = vmul.f32 0.6931472, %v1761_v9  ;;  %v1328_v14 = vld [vmem:[#allocation5 + $0x28] sm:$0xff]  ;;  %v1215_v25 = vld [vmem:[#allocation2 + $0x20] sm:$0xff]  ;;  %v1122_v9 = vld [vmem:[#allocation5 + $0x50] sm:$0xff] }
 0x3ca   :  { %942 = vst.msk [vmem:[#allocation3 + $0x30] sm:$0xff] %vm3111_vm6, %v925_v37  ;;  %v1763_v16 = vpop.eup %1762  ;;  %v1378_v63 = vmul.f32 %v1757_v34, %v1342_v5  ;;  %v1183_v29 = vadd.f32 %v1159_v45, %v1119_v51  ;;  %v933_v61 = vadd.f32 %v916_v52, %v885_v44  ;;  %1780 = vlog2.f32 %v1239_v36  ;;  %v2877_v56 = vld [vmem:[#allocation4 + $0x60] sm:$0xff]  ;;  %v1125_v44 = vld [vmem:[#allocation5 + $0x68] sm:$0xff]  ;;  %v2883_v45 = vld [vmem:[#allocation4 + $0x78] sm:$0xff] }
 0x3cb   :  { %v2859_v59 = vpop.eup %1764  ;;  %v1376_v11 = vmul.f32 %v1759_v7, %v1341_v62  ;;  %v1254_v32 = vmul.f32 0.6931472, %v1763_v16  ;;  %v1234_v48 = vld [vmem:[#allocation3 + $0x38] sm:$0xff]  ;;  %v1368_v58 = vadd.f32 1e-12, %v2873_v27  ;;  %vm3125_vm5 = vmmov %vm3042_vm0 }
 0x3cc   :  { %1406 = vst.msk [vmem:[#allocation12 + $0x18] sm:$0xff] %vm3112_vm8, %v1378_v63  ;;  %1782 = vlog2.f32 %v1234_v48  ;;  %v1767_v20 = vpop.eup %1766  ;;  %v1367_v62 = vadd.f32 1e-12, %v2877_v56  ;;  %v1222_v63 = vld [vmem:[#allocation2 + $0x58] sm:$0xff]  ;;  %vm3126_vm6 = vmmov %vm3042_vm0 }
 0x3cd   :  { %1199 = vst.msk [vmem:[#allocation5 + $0x38] sm:$0xff] %vm3042_vm0, %v1183_v29  ;;  %1784 = vrcp.f32 %v1363_v13  ;;  %v1280_v18 = vadd.f32 %v1254_v32, %v1216_v33  ;;  %v1163_v30 = vpop.xlane.xlu1 %1162  ;;  %v1157_v4 = vpop.xlane.xlu0 %1156  ;;  %v1260_v42 = vmul.f32 0.6931472, %v1767_v20  ;;  %v1219_v13 = vld [vmem:[#allocation2 + $0x40] sm:$0xff]  ;;  %vm3127_vm8 = vmmov %vm3042_vm0 }
 0x3ce   :  { %950 = vst.msk [vmem:[#allocation3 + $0x70] sm:$0xff] %vm3113_vm2, %v933_v61  ;;  %v1769_v57 = vpop.eup %1768  ;;  %1786 = vrcp.f32 %v1362_v46  ;;  %v1185_v35 = vadd.f32 %v1163_v30, %v1121_v43  ;;  %v1182_v23 = vadd.f32 %v1157_v4, %v1118_v53  ;;  %v1327_v29 = vld [vmem:[#allocation5 + $0x20] sm:$0xff]  ;;  %v1221_v53 = vld [vmem:[#allocation2 + $0x50] sm:$0xff]  ;;  %v1370_v4 = vadd.f32 1e-12, %v2883_v45  ;;  %vm3128_vm2 = vmmov %vm3042_vm0 }
 0x3cf   :  { %1405 = vst.msk [vmem:[#allocation12 + $0x10] sm:$0xff] %vm3114_vm10, %v1376_v11  ;;  %v1771_v41 = vpop.eup %1770  ;;  %1788 = vrcp.f32 %v1364_v12  ;;  %v1312_v10 = vmul.f32 %v2836_v22, %v1280_v18  ;;  %v1284_v22 = vadd.f32 %v1262_v31, %v1220_v40  ;;  %v1266_v21 = vmul.f32 0.6931472, %v1769_v57  ;;  %v1127_v18 = vld [vmem:[#allocation5 + $0x78] sm:$0xff]  ;;  %vm3129_vm10 = vmmov %vm3042_vm0 }
 0x3d0   :  { %v1242_v49 = vld [vmem:[#allocation3 + $0x78] sm:$0xff]  ;;  %v1773_v1 = vpop.eup %1772  ;;  %v1252_v3 = vmul.f32 0.6931472, %v1771_v41  ;;  %1201 = vst.msk [vmem:[#allocation5 + $0x48] sm:$0xff] %vm3115_vm14, %v1185_v35  ;;  %v1283_v12 = vadd.f32 %v1260_v42, %v1219_v13  ;;  %v1124_v35 = vld [vmem:[#allocation5 + $0x60] sm:$0xff]  ;;  %v2891_v41 = vld [vmem:[#allocation4 + $0x70] sm:$0xff] }
 0x3d1   :  { %1790 = vlog2.f32 %v1242_v49  ;;  %v1233_v2 = vld [vmem:[#allocation3 + $0x30] sm:$0xff]  ;;  %1198 = vst.msk [vmem:[#allocation5 + $0x30] sm:$0xff] %vm3116_vm3, %v1182_v23  ;;  %v1775_v55 = vpop.eup %1774  ;;  %v1344_v6 = vsub.f32 %v1312_v10, %v1328_v14  ;;  %v1167_v26 = vpop.xlane.xlu1 %1166  ;;  %v1316_v43 = vmul.f32 %v2852_v47, %v1284_v22  ;;  %v1286_v33 = vadd.f32 %v1266_v21, %v1222_v63  ;;  %v1218_v47 = vld [vmem:[#allocation2 + $0x38] sm:$0xff]  ;;  %vm3130_vm14 = vmmov %vm3042_vm0 }
 0x3d2   :  { %1792 = vlog2.f32 %v1233_v2  ;;  %v1161_v54 = vpop.xlane.xlu0 %1160  ;;  %v1777_v34 = vpop.eup %1776  ;;  %v1279_v19 = vadd.f32 %v1252_v3, %v1215_v25  ;;  %v1187_v37 = vadd.f32 %v1167_v26, %v1123_v28  ;;  %v1264_v52 = vmul.f32 0.6931472, %v1775_v55  ;;  %v1224_v28 = vld [vmem:[#allocation2 + $0x68] sm:$0xff]  ;;  %v1126_v26 = vld [vmem:[#allocation5 + $0x70] sm:$0xff]  ;;  %vm3131_vm3 = vmmov %vm3042_vm0 }
 0x3d3   :  { %v1184_v51 = vadd.f32 %v1161_v54, %v1120_v0  ;;  %v2879_v7 = vpop.eup %1778  ;;  %1794 = vrcp.f32 %v1366_v8  ;;  %v1382_v5 = vmul.f32 %v1773_v1, %v1344_v6  ;;  %v1270_v61 = vmul.f32 0.6931472, %v1777_v34 }
 0x3d4   :  { %v1311_v16 = vmul.f32 %v2830_v17, %v1279_v19  ;;  %1203 = vst.msk [vmem:[#allocation5 + $0x58] sm:$0xff] %vm3117_vm15, %v1187_v37  ;;  %v1781_v46 = vpop.eup %1780  ;;  %v1285_v10 = vadd.f32 %v1264_v52, %v1221_v53  ;;  %v1315_v14 = vmul.f32 %v2846_v50, %v1283_v12  ;;  %v1369_v34 = vadd.f32 1e-12, %v2891_v41  ;;  %vm3132_vm15 = vmmov %vm3042_vm0 }
 0x3d5   :  { %v1241_v36 = vld [vmem:[#allocation3 + $0x70] sm:$0xff]  ;;  %1200 = vst.msk [vmem:[#allocation5 + $0x40] sm:$0xff] %vm3118_vm11, %v1184_v51  ;;  %v1171_v11 = vpop.xlane.xlu1 %1170  ;;  %v1268_v0 = vmul.f32 0.6931472, %v1781_v46  ;;  %v1288_v3 = vadd.f32 %v1270_v61, %v1224_v28  ;;  %v1226_v51 = vld [vmem:[#allocation2 + $0x78] sm:$0xff]  ;;  %vm3133_vm11 = vmmov %vm3042_vm0 }
 0x3d6   :  { %1796 = vlog2.f32 %v1241_v36  ;;  %1408 = vst.msk [vmem:[#allocation12 + $0x28] sm:$0xff] %vm3119_vm7, %v1382_v5  ;;  %v1165_v32 = vpop.xlane.xlu0 %1164  ;;  %v1783_v48 = vpop.eup %1782  ;;  %v1343_v17 = vsub.f32 %v1311_v16, %v1327_v29  ;;  %v1189_v20 = vadd.f32 %v1171_v11, %v1125_v44  ;;  %v1330_v36 = vld [vmem:[#allocation5 + $0x38] sm:$0xff]  ;;  %vm3134_vm7 = vmmov %vm3042_vm0 }
 0x3d7   :  { %1798 = vrcp.f32 %v1365_v38  ;;  %v1186_v31 = vadd.f32 %v1165_v32, %v1122_v9  ;;  %v1785_v30 = vpop.eup %1784  ;;  %v1258_v57 = vmul.f32 0.6931472, %v1783_v48  ;;  %v1332_v40 = vld [vmem:[#allocation5 + $0x48] sm:$0xff]  ;;  %v1317_v9 = vmul.f32 %v2862_v60, %v1285_v10 }
 0x3d8   :  { %1800 = vrcp.f32 %v1368_v58  ;;  %v1787_v23 = vpop.eup %1786  ;;  %v1380_v38 = vmul.f32 %v2859_v59, %v1343_v17  ;;  %v1348_v8 = vsub.f32 %v1316_v43, %v1332_v40  ;;  %1205 = vst.msk [vmem:[#allocation5 + $0x68] sm:$0xff] %vm3120_vm1, %v1189_v20  ;;  %v1318_v59 = vmul.f32 %v2864_v24, %v1286_v33  ;;  %v1223_v58 = vld [vmem:[#allocation2 + $0x60] sm:$0xff] }
 0x3d9   :  { %1802 = vrcp.f32 %v1367_v62  ;;  %1202 = vst.msk [vmem:[#allocation5 + $0x50] sm:$0xff] %vm3121_vm9, %v1186_v31  ;;  %v1789_v49 = vpop.eup %1788  ;;  %v1282_v1 = vadd.f32 %v1258_v57, %v1218_v47  ;;  %v1175_v2 = vpop.xlane.xlu1 %1174  ;;  %v1217_v62 = vld [vmem:[#allocation2 + $0x30] sm:$0xff]  ;;  %v1287_v46 = vadd.f32 %v1268_v0, %v1223_v58 }
 0x3da   :  { %v1169_v55 = vpop.xlane.xlu0 %1168  ;;  %1407 = vst.msk [vmem:[#allocation12 + $0x20] sm:$0xff] %vm3122_vm4, %v1380_v38  ;;  %v1390_v42 = vmul.f32 %v1789_v49, %v1348_v8  ;;  %v1191_v6 = vadd.f32 %v1175_v2, %v1127_v18  ;;  %1804 = vrcp.f32 %v1370_v4  ;;  %v1225_v18 = vld [vmem:[#allocation2 + $0x70] sm:$0xff] }
 0x3db   :  { %v1791_v25 = vpop.eup %1790  ;;  %v1188_v22 = vadd.f32 %v1169_v55, %v1124_v35  ;;  %v1314_v19 = vmul.f32 %v2849_v15, %v1282_v1  ;;  %v1334_v50 = vld [vmem:[#allocation5 + $0x58] sm:$0xff]  ;;  %v1320_v15 = vmul.f32 %v2873_v27, %v1288_v3  ;;  %1806 = vrcp.f32 %v1369_v34 }
 0x3dc   :  { %v1793_v54 = vpop.eup %1792  ;;  %v1274_v21 = vmul.f32 0.6931472, %v1791_v25  ;;  %v1331_v37 = vld [vmem:[#allocation5 + $0x40] sm:$0xff]  ;;  %1412 = vst.msk [vmem:[#allocation12 + $0x48] sm:$0xff] %vm3123_vm12, %v1390_v42  ;;  %v1350_v44 = vsub.f32 %v1318_v59, %v1334_v50  ;;  %v1319_v57 = vmul.f32 %v2877_v56, %v1287_v46 }
 0x3dd   :  { %v1256_v5 = vmul.f32 0.6931472, %v1793_v54  ;;  %v1347_v24 = vsub.f32 %v1315_v14, %v1331_v37  ;;  %1207 = vst.msk [vmem:[#allocation5 + $0x78] sm:$0xff] %vm3124_vm13, %v1191_v6  ;;  %v1795_v13 = vpop.eup %1794  ;;  %v1346_v52 = vsub.f32 %v1314_v19, %v1330_v36 }
 0x3de   :  { %1204 = vst.msk [vmem:[#allocation5 + $0x60] sm:$0xff] %vm3125_vm5, %v1188_v22  ;;  %v1290_v16 = vadd.f32 %v1274_v21, %v1226_v51  ;;  %v1173_v63 = vpop.xlane.xlu0 %1172  ;;  %v1394_v43 = vmul.f32 %v1795_v13, %v1350_v44 }
 0x3df   :  { %v1281_v61 = vadd.f32 %v1256_v5, %v1217_v62  ;;  %v1388_v12 = vmul.f32 %v1785_v30, %v1347_v24  ;;  %v1190_v11 = vadd.f32 %v1173_v63, %v1126_v26  ;;  %v1386_v60 = vmul.f32 %v1787_v23, %v1346_v52  ;;  %v1336_v53 = vld [vmem:[#allocation5 + $0x68] sm:$0xff]  ;;  %v1329_v30 = vld [vmem:[#allocation5 + $0x30] sm:$0xff] }
 0x3e0   :  { %v1797_v29 = vpop.eup %1796  ;;  %v1333_v17 = vld [vmem:[#allocation5 + $0x50] sm:$0xff]  ;;  %1414 = vst.msk [vmem:[#allocation12 + $0x58] sm:$0xff] %vm3126_vm6, %v1394_v43  ;;  %v1352_v27 = vsub.f32 %v1320_v15, %v1336_v53  ;;  %v1322_v4 = vmul.f32 %v2883_v45, %v1290_v16 }
 0x3e1   :  { %v1799_v32 = vpop.eup %1798  ;;  %v1272_v48 = vmul.f32 0.6931472, %v1797_v29  ;;  %v1313_v33 = vmul.f32 %v2840_v39, %v1281_v61  ;;  %1411 = vst.msk [vmem:[#allocation12 + $0x40] sm:$0xff] %vm3127_vm8, %v1388_v12  ;;  %v1349_v20 = vsub.f32 %v1317_v9, %v1333_v17 }
 0x3e2   :  { %1206 = vst.msk [vmem:[#allocation5 + $0x70] sm:$0xff] %vm3042_vm0, %v1190_v11  ;;  %v1801_v31 = vpop.eup %1800 }
 0x3e3   :  { %1410 = vst.msk [vmem:[#allocation12 + $0x38] sm:$0xff] %vm3128_vm2, %v1386_v60  ;;  %v1803_v40 = vpop.eup %1802  ;;  %v1345_v35 = vsub.f32 %v1313_v33, %v1329_v30  ;;  %v1398_v39 = vmul.f32 %v1801_v31, %v1352_v27  ;;  %v1392_v23 = vmul.f32 %v1799_v32, %v1349_v20  ;;  %v1289_v28 = vadd.f32 %v1272_v48, %v1225_v18 }
 0x3e4   :  { %v1338_v47 = vld [vmem:[#allocation5 + $0x78] sm:$0xff]  ;;  %v1805_v0 = vpop.eup %1804 }
 0x3e5   :  { %v1335_v38 = vld [vmem:[#allocation5 + $0x60] sm:$0xff]  ;;  %v1384_v8 = vmul.f32 %v2879_v7, %v1345_v35  ;;  %1416 = vst.msk [vmem:[#allocation12 + $0x68] sm:$0xff] %vm3129_vm10, %v1398_v39  ;;  %v1354_v10 = vsub.f32 %v1322_v4, %v1338_v47  ;;  %v1321_v1 = vmul.f32 %v2891_v41, %v1289_v28  ;;  %v1807_v3 = vpop.eup %1806 }
 0x3e6   :  { %1413 = vst.msk [vmem:[#allocation12 + $0x50] sm:$0xff] %vm3130_vm14, %v1392_v23  ;;  %v1351_v49 = vsub.f32 %v1319_v57, %v1335_v38 }
 0x3e7   :  { %1409 = vst.msk [vmem:[#allocation12 + $0x30] sm:$0xff] %vm3131_vm3, %v1384_v8  ;;  %v1402_v45 = vmul.f32 %v1805_v0, %v1354_v10 }
 0x3e8   :  { %v1396_v56 = vmul.f32 %v1803_v40, %v1351_v49 }
 0x3e9   :  { %v1337_v14 = vld [vmem:[#allocation5 + $0x70] sm:$0xff]  ;;  %1418 = vst.msk [vmem:[#allocation12 + $0x78] sm:$0xff] %vm3132_vm15, %v1402_v45 }
 0x3ea   :  { %1415 = vst.msk [vmem:[#allocation12 + $0x60] sm:$0xff] %vm3133_vm11, %v1396_v56  ;;  %v1353_v7 = vsub.f32 %v1321_v1, %v1337_v14 }
 0x3ec   :  { %v1400_v2 = vmul.f32 %v1807_v3, %v1353_v7 }
 0x3ee   :  { %1417 = vst.msk [vmem:[#allocation12 + $0x70] sm:$0xff] %vm3134_vm7, %v1400_v2 }
 0x3ef   :  { %1885 = shalt.err (!%p1882_p0)
}
 0x3f0   :  { %s1886_s27 = scalar_lea.hbm %s2939_s3, 2048 }
 0x3f1   :  { %p1887_p1 = scmp.ne.s32.totalorder %s2939_s3, %s1886_s27  ;;  %p1890_p2 = scmp.lt.u32.totalorder %s1886_s27, %s2939_s3 }
 0x3f3   :  { %p1892_p3 = pnand %p1890_p2, %p1887_p1 }
 0x3f5   :  { %1895 = shalt.err (!%p1892_p3)
}
 0x3f6   :  { %1430 = dma.vmem_to_hbm [thread:$0]  %s1425_s21, 2048, %s2939_s3, [#allocation8], %s1904_s24, %s1904_s24, %s1905_s25  }
 0x3f7   :  { %1900 = dma.done.wait [#allocation8], 2048  }
 0x3f8   :  { %1901 = vsyncadd [#allocation8], 4294965248 }
 0x3f9   :  { %1434 = vsyncpa [#allocation7], 1 }
 0x3fa   :  { %1435 = vsyncpa [#allocation10], 1 }
 0x3fb   :  { %1436 = vsyncpa [#allocation8], 1 }

</bundles_post_ra>
